<compile_context>
chip_gen: v7x
topology: tpu7x:2x2x1
jax: 0.10.0
libtpu: 0.0.40
codegen_flags: <defaults>
</compile_context>

<pallas_src>
import functools

import jax
import jax.numpy as jnp
from jax.experimental import pallas as pl
from jax.experimental.pallas import tpu as pltpu


def _lead_pad(pad):
    """Sublane-aligned offset of the first real z row in the depthwise scratch."""
    return ((pad + 7) // 8) * 8 if pad > 0 else 0


# ----------------------------------------------------------------------------
# Kernel 1: fused pointwise_conv1 (single (cp, 2*cp) matmul) + GLU.
# ----------------------------------------------------------------------------
def _pwconv1_glu_kernel(x_ref, w1_ref, b1_ref, z_ref, *, matmul_dtype):
    cp = z_ref.shape[-1]
    x = x_ref[...].astype(matmul_dtype)
    y = jnp.dot(x, w1_ref[...], preferred_element_type=jnp.float32) + b1_ref[...]
    a = y[:, :cp]                      # GLU value half (whole-vreg lane split)
    g = y[:, cp:]                      # GLU gate half
    z_ref[...] = (a * jax.nn.sigmoid(g)).astype(z_ref.dtype)


# ----------------------------------------------------------------------------
# Kernel 2: depthwise conv along time + per-block centered BN statistics.
# Block = one batch element: z (T, cp) -> acc (T, cp), stats (2, cp).
# ----------------------------------------------------------------------------
def _dwconv_stats_kernel(z_ref, wd_ref, bd_ref, acc_ref, stats_ref, zp_ref):
    T, C = z_ref.shape
    K = wd_ref.shape[0]
    pad = (K - 1) // 2
    off = _lead_pad(pad)

    # Zero only the two halo strips; the big z store starts at a sublane-
    # aligned offset (off % 8 == 0) so it is an unmasked store.
    if pad > 0:
        zp_ref[off - pad:off, :] = jnp.zeros((pad, C), zp_ref.dtype)
        zp_ref[off + T:off + T + pad, :] = jnp.zeros((pad, C), zp_ref.dtype)
    zp_ref[off:off + T, :] = z_ref[...]

    acc = jnp.zeros((T, C), jnp.float32) + bd_ref[...]
    for k in range(K):                                    # K is small & static
        s = off - pad + k
        acc = acc + zp_ref[s:s + T, :].astype(jnp.float32) * wd_ref[k, :]

    acc_ref[...] = acc.astype(acc_ref.dtype)

    # Centered per-block statistics (combined across blocks with the parallel
    # variance formula in XLA) - avoids E[x^2] - E[x]^2 cancellation.
    bsum = jnp.sum(acc, axis=0, keepdims=True)            # (1, C)
    bmean = bsum * (1.0 / T)
    m2 = jnp.sum((acc - bmean) ** 2, axis=0, keepdims=True)
    stats_ref[...] = jnp.concatenate([bsum, m2], axis=0)


# ----------------------------------------------------------------------------
# Kernel 3: folded BatchNorm (scale/shift) + ReLU + pointwise_conv2.
# ----------------------------------------------------------------------------
def _bn_relu_pwconv2_kernel(h_ref, scale_ref, shift_ref, w2_ref, b2_ref, o_ref,
                            *, matmul_dtype):
    h = h_ref[...].astype(jnp.float32) * scale_ref[...] + shift_ref[...]
    h = jnp.maximum(h, 0.0)
    out = jnp.dot(h.astype(matmul_dtype), w2_ref[...],
                  preferred_element_type=jnp.float32) + b2_ref[...]
    o_ref[...] = out.astype(o_ref.dtype)


# ----------------------------------------------------------------------------
# Host-side parameter preparation: split / transpose / fuse / channel-pad.
# ----------------------------------------------------------------------------
def _prepare_params(p, cp, matmul_dtype):
    C = p["w2"].shape[0]
    pc = cp - C

    def padc(a, axes):
        if pc == 0:
            return a
        return jnp.pad(a, tuple((0, pc) if ax else (0, 0) for ax in axes))

    # pointwise_conv1 (2C, C): split into GLU value/gate halves, transpose to
    # matmul layout and re-fuse into one (cp, 2*cp) weight (single wide matmul).
    w1a = padc(p["w1"][:C].T, (True, True))
    w1g = padc(p["w1"][C:].T, (True, True))
    w1 = jnp.concatenate([w1a, w1g], axis=1).astype(matmul_dtype)     # (cp, 2cp)
    b1 = jnp.concatenate([padc(p["b1"][:C], (True,)),
                          padc(p["b1"][C:], (True,))]).reshape(1, 2 * cp)

    wd = padc(p["wd"].T, (False, True))                               # (K, cp)
    bd = padc(p["bd"], (True,)).reshape(1, cp)
    gamma = padc(p["gamma"], (True,))
    beta = padc(p["beta"], (True,))
    w2 = padc(p["w2"].T, (True, True)).astype(matmul_dtype)           # (cp, cp)
    b2 = padc(p["b2"], (True,)).reshape(1, cp)
    return w1, b1, wd, bd, gamma, beta, w2, b2


def _vmem_budget():
    """Generation-aware scoped-VMEM budget (~half of physical VMEM):
    64 MiB on v5e/v6e (128 MiB VMEM), 32 MiB on v7x (64 MiB VMEM)."""
    try:
        cap = int(pltpu.get_tpu_info().vmem_capacity_bytes)
    except Exception:
        cap = 64 * 1024 * 1024
    limit = max(min(cap // 2, 96 * 1024 * 1024), 32 * 1024 * 1024)
    return int(limit), bool(cap >= 128 * 1024 * 1024)


@functools.partial(jax.jit,
                   static_argnames=("matmul_dtype", "single_buffer_weights"))
def convolution_module(x, params, *, matmul_dtype=jnp.bfloat16,
                       single_buffer_weights=True):
    """Conformer ConvolutionModule forward.

    x: (B, T, C) float32. params: PyTorch-layout weights (see init_params).
    matmul_dtype: MXU operand / inter-pass activation dtype. bfloat16 (the
      default) is the recommended production setting on all TPU generations
      (v5e included: its MXU peak is bf16); float32 reproduces the PyTorch
      numerics exactly. Note: with bf16, x / GLU / depthwise inputs and the
      inter-pass activations are bf16-quantized, not just the matmuls.
    """
    B, T, C = x.shape
    K = params["wd"].shape[1]
    assert (K - 1) % 2 == 0, "kernel_size must be odd (the PyTorch module asserts this)"
    pad = (K - 1) // 2
    cp = ((C + 127) // 128) * 128             # lane-dense channel count
    rows = B * T
    inter_dtype = matmul_dtype                # z / depthwise activations in HBM

    vmem_limit, big_vmem = _vmem_budget()
    mt = min(rows, 1024 if big_vmem else 512)  # row tile for the MXU passes

    w1, b1, wd, bd, gamma, beta, w2, b2 = _prepare_params(params, cp, matmul_dtype)

    # Flat row view; channel-pad only when C is not already lane-dense.
    x2 = x.reshape(rows, C)
    if cp != C:
        x2 = jnp.pad(x2, ((0, 0), (0, cp - C)))

    def const_spec(shape):
        # Constant-index operands: single-buffer (no point double-buffering a
        # block whose index never changes).
        if single_buffer_weights:
            return pl.BlockSpec(shape, lambda i: (0,) * len(shape),
                                pipeline_mode=pl.Buffered(1))
        return pl.BlockSpec(shape, lambda i: (0,) * len(shape))

    isize = jnp.dtype(inter_dtype).itemsize
    msize = jnp.dtype(matmul_dtype).itemsize

    # ---------------- K1: fused pointwise_conv1 + GLU -----------------------
    z2 = pl.pallas_call(
        functools.partial(_pwconv1_glu_kernel, matmul_dtype=matmul_dtype),
        grid=(pl.cdiv(rows, mt),),
        in_specs=[
            pl.BlockSpec((mt, cp), lambda i: (i, 0)),
            const_spec((cp, 2 * cp)),
            const_spec((1, 2 * cp)),
        ],
        out_specs=pl.BlockSpec((mt, cp), lambda i: (i, 0)),
        out_shape=jax.ShapeDtypeStruct((rows, cp), inter_dtype),
        compiler_params=pltpu.CompilerParams(
            dimension_semantics=("parallel",), vmem_limit_bytes=vmem_limit),
        cost_estimate=pl.CostEstimate(
            flops=4 * rows * cp * cp + 4 * rows * cp,
            transcendentals=rows * cp,
            bytes_accessed=rows * cp * (4 + isize) + 2 * cp * cp * msize),
    )(x2, w1, b1)

    # ---------------- K2: depthwise conv + BN partial statistics ------------
    off = _lead_pad(pad)
    acc, stats = pl.pallas_call(
        _dwconv_stats_kernel,
        grid=(B,),
        in_specs=[
            pl.BlockSpec((None, T, cp), lambda b: (b, 0, 0)),
            const_spec((K, cp)),
            const_spec((1, cp)),
        ],
        out_specs=(
            pl.BlockSpec((None, T, cp), lambda b: (b, 0, 0)),
            pl.BlockSpec((None, 2, cp), lambda b: (b, 0, 0)),
        ),
        out_shape=(
            jax.ShapeDtypeStruct((B, T, cp), inter_dtype),
            jax.ShapeDtypeStruct((B, 2, cp), jnp.float32),
        ),
        scratch_shapes=[pltpu.VMEM((off + T + pad, cp), inter_dtype)],
        compiler_params=pltpu.CompilerParams(
            dimension_semantics=("parallel",), vmem_limit_bytes=vmem_limit),
        cost_estimate=pl.CostEstimate(
            flops=2 * rows * cp * K + 6 * rows * cp,
            transcendentals=0,
            bytes_accessed=2 * rows * cp * isize + (K + 4) * cp * 4),
    )(z2.reshape(B, T, cp), wd, bd)
    # TODO(synk): for very long sequences (T*cp*itemsize approaching the VMEM
    # budget) this pass should additionally be tiled over time with a carried
    # halo; overlapping input windows are not expressible with plain Blocked
    # BlockSpecs, so it stays at one batch element per grid step here.

    # ------------- combine BN statistics & fold the affine (tiny XLA) -------
    n = jnp.float32(rows)
    bsum = stats[:, 0, :]                                    # (B, cp)
    bm2 = stats[:, 1, :]                                     # (B, cp)
    mean = jnp.sum(bsum, axis=0) / n
    bmean = bsum / jnp.float32(T)
    m2 = jnp.sum(bm2, axis=0) + jnp.float32(T) * jnp.sum((bmean - mean) ** 2, axis=0)
    var = jnp.maximum(m2 / n, 0.0)                           # biased (training) var
    rstd = jax.lax.rsqrt(var + 1e-5)
    scale = (gamma * rstd).reshape(1, cp)
    shift = (beta - mean * gamma * rstd).reshape(1, cp)

    # ---------------- K3: folded BN + ReLU + pointwise_conv2 ----------------
    out2 = pl.pallas_call(
        functools.partial(_bn_relu_pwconv2_kernel, matmul_dtype=matmul_dtype),
        grid=(pl.cdiv(rows, mt),),
        in_specs=[
            pl.BlockSpec((mt, cp), lambda i: (i, 0)),
            const_spec((1, cp)),
            const_spec((1, cp)),
            const_spec((cp, cp)),
            const_spec((1, cp)),
        ],
        out_specs=pl.BlockSpec((mt, cp), lambda i: (i, 0)),
        out_shape=jax.ShapeDtypeStruct((rows, cp), jnp.float32),
        compiler_params=pltpu.CompilerParams(
            dimension_semantics=("parallel",), vmem_limit_bytes=vmem_limit),
        cost_estimate=pl.CostEstimate(
            flops=2 * rows * cp * cp + 3 * rows * cp,
            transcendentals=0,
            bytes_accessed=rows * cp * (4 + isize) + cp * cp * msize),
    )(acc.reshape(rows, cp), scale, shift, w2, b2)

    out = out2 if cp == C else out2[:, :C]
    return out.reshape(B, T, C)


# ----------------------------------------------------------------------------
# PyTorch-layout parameter init and a plain-JAX reference (training-mode BN).
# ----------------------------------------------------------------------------
def init_params(key, channels, kernel_size):
    C, K = channels, kernel_size
    ks = jax.random.split(key, 6)
    s = 0.1
    return {
        "w1": s * jax.random.normal(ks[0], (2 * C, C), jnp.float32),  # Conv1d(C,2C,1)
        "b1": s * jax.random.normal(ks[1], (2 * C,), jnp.float32),
        "wd": s * jax.random.normal(ks[2], (C, K), jnp.float32),      # depthwise (C,1,K)
        "bd": s * jax.random.normal(ks[3], (C,), jnp.float32),
        "gamma": jnp.ones((C,), jnp.float32),                         # BatchNorm1d
        "beta": jnp.zeros((C,), jnp.float32),
        "w2": s * jax.random.normal(ks[4], (C, C), jnp.float32),      # Conv1d(C,C,1)
        "b2": s * jax.random.normal(ks[5], (C,), jnp.float32),
    }


def reference_forward(x, p):
    B, T, C = x.shape
    K = p["wd"].shape[1]
    pad = (K - 1) // 2
    y = x.reshape(B * T, C) @ p["w1"].T + p["b1"]
    a, g = y[:, :C], y[:, C:]
    z = (a * jax.nn.sigmoid(g)).reshape(B, T, C)
    zp = jnp.pad(z, ((0, 0), (pad, pad), (0, 0)))
    acc = jnp.zeros((B, T, C), jnp.float32) + p["bd"]
    for k in range(K):
        acc = acc + zp[:, k:k + T, :] * p["wd"][:, k]
    mean = jnp.mean(acc, axis=(0, 1), keepdims=True)
    var = jnp.mean((acc - mean) ** 2, axis=(0, 1), keepdims=True)
    h = (acc - mean) / jnp.sqrt(var + 1e-5) * p["gamma"] + p["beta"]
    h = jnp.maximum(h, 0.0)
    out = h.reshape(B * T, C) @ p["w2"].T + p["b2"]
    return out.reshape(B, T, C)


_BUFFERED_ONE_OK = [True]


def _run(x, params, **kw):
    """Call the module; fall back to double-buffered weights if Buffered(1)
    is rejected by this jax version."""
    if _BUFFERED_ONE_OK[0]:
        try:
            return jax.block_until_ready(
                convolution_module(x, params, single_buffer_weights=True, **kw))
        except Exception:
            _BUFFERED_ONE_OK[0] = False
    return jax.block_until_ready(
        convolution_module(x, params, single_buffer_weights=False, **kw))


if __name__ == "__main__":
    B, T, C, K = 2, 16, 8, 3
    key = jax.random.PRNGKey(0)
    kx, kp = jax.random.split(key)
    x = jax.random.normal(kx, (B, T, C), jnp.float32)
    params = init_params(kp, C, K)

    ref = reference_forward(x, params)

    # Exact-precision path: f32 MXU matmuls and f32 inter-pass activations.
    out_f32 = _run(x, params, matmul_dtype=jnp.float32)
    assert out_f32.shape == (B, T, C)
    assert jnp.allclose(out_f32, ref, atol=1e-4, rtol=1e-4), "f32 mismatch vs reference"

    # Production path (default): bf16 MXU operands + bf16 inter-pass
    # activations with f32 accumulation. Recommended on v5e/v6e/v7x alike.
    out_bf16 = _run(x, params)
    assert out_bf16.shape == (B, T, C)
    assert jnp.allclose(out_bf16, ref, atol=2e-1, rtol=2e-1), "bf16 path diverged"

    print("KERNEL_OK")
</pallas_src>

<mosaic_0001>
module attributes {stable_mosaic.version = 11 : i64} {
  func.func @_pwconv1_glu_kernel(%arg0: i32, %arg1: memref<32x128xf32, #tpu.memory_space<vmem>>, %arg2: memref<128x256xf32, #tpu.memory_space<vmem>>, %arg3: memref<1x256xf32, #tpu.memory_space<vmem>>, %arg4: memref<32x128xf32, #tpu.memory_space<vmem>>) attributes {dimension_semantics = [#tpu.dimension_semantics<parallel>], iteration_bounds = array<i64: 1>, scalar_prefetch = 0 : i64, scratch_operands = 0 : i64, tpu.core_type = #tpu.core_type<tc>, window_params = [{transform_indices = @transform_0, window_bounds = array<i64: 32, 128>}, {pipeline_mode = #tpu.pipeline_mode<synchronous>, transform_indices = @transform_1, window_bounds = array<i64: 128, 256>}, {pipeline_mode = #tpu.pipeline_mode<synchronous>, transform_indices = @transform_2, window_bounds = array<i64: 1, 256>}, {transform_indices = @transform_3, window_bounds = array<i64: 32, 128>}]} {
    %c0 = arith.constant 0 : index
    %c0_0 = arith.constant 0 : index
    %0 = vector.load %arg1[%c0, %c0_0] : memref<32x128xf32, #tpu.memory_space<vmem>>, vector<32x128xf32>
    %c0_1 = arith.constant 0 : index
    %c0_2 = arith.constant 0 : index
    %1 = vector.load %arg2[%c0_1, %c0_2] : memref<128x256xf32, #tpu.memory_space<vmem>>, vector<128x256xf32>
    %cst = arith.constant dense<0.000000e+00> : vector<32x256xf32>
    %2 = tpu.matmul %0, %1, %cst {dimension_numbers = #tpu.dot_dimension_numbers<[1], [0], [0], [1], [0, 0, 1, 1], [], []>} : vector<32x128xf32>, vector<128x256xf32>, vector<32x256xf32> -> vector<32x256xf32>
    %c0_3 = arith.constant 0 : index
    %c0_4 = arith.constant 0 : index
    %3 = vector.load %arg3[%c0_3, %c0_4] : memref<1x256xf32, #tpu.memory_space<vmem>>, vector<1x256xf32>
    %4 = vector.broadcast %3 : vector<1x256xf32> to vector<32x256xf32>
    %5 = arith.addf %2, %4 : vector<32x256xf32>
    %6 = vector.extract_strided_slice %5 {offsets = [0, 0], sizes = [32, 128], strides = [1, 1]} : vector<32x256xf32> to vector<32x128xf32>
    %7 = vector.extract_strided_slice %5 {offsets = [0, 128], sizes = [32, 128], strides = [1, 1]} : vector<32x256xf32> to vector<32x128xf32>
    %8 = arith.negf %7 : vector<32x128xf32>
    %9 = math.exp %8 : vector<32x128xf32>
    %cst_5 = arith.constant 1.000000e+00 : f32
    %10 = vector.broadcast %cst_5 : f32 to vector<32x128xf32>
    %11 = arith.addf %10, %9 : vector<32x128xf32>
    %12 = arith.divf %10, %11 : vector<32x128xf32>
    %13 = arith.mulf %6, %12 : vector<32x128xf32>
    %c0_6 = arith.constant 0 : index
    %c0_7 = arith.constant 0 : index
    %14 = vector.load %arg4[%c0_6, %c0_7] : memref<32x128xf32, #tpu.memory_space<vmem>>, vector<32x128xf32>
    tpu.vector_store %arg4[%c0_6, %c0_7], %13 {strides = array<i32>} : memref<32x128xf32, #tpu.memory_space<vmem>>, vector<32x128xf32>,
    return
  }
  func.func @transform_0(%arg0: i32) -> (i32, i32) {
    %c0_i32 = arith.constant 0 : i32
    %c0_i32_0 = arith.constant 0 : i32
    return %arg0, %c0_i32 : i32, i32
  }
  func.func @transform_1(%arg0: i32) -> (i32, i32) {
    %c0_i32 = arith.constant 0 : i32
    %c0_i32_0 = arith.constant 0 : i32
    %c0_i32_1 = arith.constant 0 : i32
    return %c0_i32, %c0_i32_0 : i32, i32
  }
  func.func @transform_2(%arg0: i32) -> (i32, i32) {
    %c0_i32 = arith.constant 0 : i32
    %c0_i32_0 = arith.constant 0 : i32
    %c0_i32_1 = arith.constant 0 : i32
    return %c0_i32, %c0_i32_0 : i32, i32
  }
  func.func @transform_3(%arg0: i32) -> (i32, i32) {
    %c0_i32 = arith.constant 0 : i32
    %c0_i32_0 = arith.constant 0 : i32
    return %arg0, %c0_i32 : i32, i32
  }
}

module attributes {stable_mosaic.version = 11 : i64} {
  func.func @_dwconv_stats_kernel(%arg0: i32, %arg1: memref<1x16x128xf32, #tpu.memory_space<vmem>>, %arg2: memref<3x128xf32, #tpu.memory_space<vmem>>, %arg3: memref<1x128xf32, #tpu.memory_space<vmem>>, %arg4: memref<1x16x128xf32, #tpu.memory_space<vmem>>, %arg5: memref<1x2x128xf32, #tpu.memory_space<vmem>>, %arg6: memref<25x128xf32, #tpu.memory_space<vmem>>) attributes {dimension_semantics = [#tpu.dimension_semantics<parallel>], iteration_bounds = array<i64: 2>, scalar_prefetch = 0 : i64, scratch_operands = 1 : i64, tpu.core_type = #tpu.core_type<tc>, window_params = [{transform_indices = @transform_0, window_bounds = array<i64: 1, 16, 128>}, {pipeline_mode = #tpu.pipeline_mode<synchronous>, transform_indices = @transform_1, window_bounds = array<i64: 3, 128>}, {pipeline_mode = #tpu.pipeline_mode<synchronous>, transform_indices = @transform_2, window_bounds = array<i64: 1, 128>}, {transform_indices = @transform_3, window_bounds = array<i64: 1, 16, 128>}, {transform_indices = @transform_4, window_bounds = array<i64: 1, 2, 128>}]} {
    %cst = arith.constant 0.000000e+00 : f32
    %0 = vector.broadcast %cst : f32 to vector<1x128xf32>
    %c7 = arith.constant 7 : index
    %c0 = arith.constant 0 : index
    %1 = vector.load %arg6[%c7, %c0] : memref<25x128xf32, #tpu.memory_space<vmem>>, vector<1x128xf32>
    tpu.vector_store %arg6[%c7, %c0], %0 {strides = array<i32>} : memref<25x128xf32, #tpu.memory_space<vmem>>, vector<1x128xf32>,
    %cst_0 = arith.constant 0.000000e+00 : f32
    %2 = vector.broadcast %cst_0 : f32 to vector<1x128xf32>
    %c24 = arith.constant 24 : index
    %c0_1 = arith.constant 0 : index
    %3 = vector.load %arg6[%c24, %c0_1] : memref<25x128xf32, #tpu.memory_space<vmem>>, vector<1x128xf32>
    tpu.vector_store %arg6[%c24, %c0_1], %2 {strides = array<i32>} : memref<25x128xf32, #tpu.memory_space<vmem>>, vector<1x128xf32>,
    %c0_2 = arith.constant 0 : index
    %c0_3 = arith.constant 0 : index
    %c0_4 = arith.constant 0 : index
    %4 = vector.load %arg1[%c0_2, %c0_3, %c0_4] : memref<1x16x128xf32, #tpu.memory_space<vmem>>, vector<1x16x128xf32>
    %5 = vector.shape_cast %4 : vector<1x16x128xf32> to vector<16x128xf32>
    %c8 = arith.constant 8 : index
    %c0_5 = arith.constant 0 : index
    %6 = vector.load %arg6[%c8, %c0_5] : memref<25x128xf32, #tpu.memory_space<vmem>>, vector<16x128xf32>
    tpu.vector_store %arg6[%c8, %c0_5], %5 {strides = array<i32>} : memref<25x128xf32, #tpu.memory_space<vmem>>, vector<16x128xf32>,
    %cst_6 = arith.constant 0.000000e+00 : f32
    %7 = vector.broadcast %cst_6 : f32 to vector<16x128xf32>
    %c0_7 = arith.constant 0 : index
    %c0_8 = arith.constant 0 : index
    %8 = vector.load %arg3[%c0_7, %c0_8] : memref<1x128xf32, #tpu.memory_space<vmem>>, vector<1x128xf32>
    %9 = vector.broadcast %8 : vector<1x128xf32> to vector<16x128xf32>
    %10 = arith.addf %7, %9 : vector<16x128xf32>
    %c7_9 = arith.constant 7 : index
    %c0_10 = arith.constant 0 : index
    %11 = vector.load %arg6[%c7_9, %c0_10] : memref<25x128xf32, #tpu.memory_space<vmem>>, vector<16x128xf32>
    %c0_11 = arith.constant 0 : index
    %c0_12 = arith.constant 0 : index
    %12 = vector.load %arg2[%c0_11, %c0_12] : memref<3x128xf32, #tpu.memory_space<vmem>>, vector<1x128xf32>
    %13 = vector.shape_cast %12 : vector<1x128xf32> to vector<128xf32>
    %14 = vector.shape_cast %13 : vector<128xf32> to vector<1x128xf32>
    %15 = vector.broadcast %14 : vector<1x128xf32> to vector<16x128xf32>
    %16 = arith.mulf %11, %15 : vector<16x128xf32>
    %17 = arith.addf %10, %16 : vector<16x128xf32>
    %c8_13 = arith.constant 8 : index
    %c0_14 = arith.constant 0 : index
    %18 = vector.load %arg6[%c8_13, %c0_14] : memref<25x128xf32, #tpu.memory_space<vmem>>, vector<16x128xf32>
    %c1 = arith.constant 1 : index
    %c0_15 = arith.constant 0 : index
    %19 = vector.load %arg2[%c1, %c0_15] : memref<3x128xf32, #tpu.memory_space<vmem>>, vector<1x128xf32>
    %20 = vector.shape_cast %19 : vector<1x128xf32> to vector<128xf32>
    %21 = vector.shape_cast %20 : vector<128xf32> to vector<1x128xf32>
    %22 = vector.broadcast %21 : vector<1x128xf32> to vector<16x128xf32>
    %23 = arith.mulf %18, %22 : vector<16x128xf32>
    %24 = arith.addf %17, %23 : vector<16x128xf32>
    %c9 = arith.constant 9 : index
    %c0_16 = arith.constant 0 : index
    %25 = vector.load %arg6[%c9, %c0_16] : memref<25x128xf32, #tpu.memory_space<vmem>>, vector<16x128xf32>
    %c2 = arith.constant 2 : index
    %c0_17 = arith.constant 0 : index
    %26 = vector.load %arg2[%c2, %c0_17] : memref<3x128xf32, #tpu.memory_space<vmem>>, vector<1x128xf32>
    %27 = vector.shape_cast %26 : vector<1x128xf32> to vector<128xf32>
    %28 = vector.shape_cast %27 : vector<128xf32> to vector<1x128xf32>
    %29 = vector.broadcast %28 : vector<1x128xf32> to vector<16x128xf32>
    %30 = arith.mulf %25, %29 : vector<16x128xf32>
    %31 = arith.addf %24, %30 : vector<16x128xf32>
    %c0_18 = arith.constant 0 : index
    %c0_19 = arith.constant 0 : index
    %c0_20 = arith.constant 0 : index
    %32 = vector.load %arg4[%c0_18, %c0_19, %c0_20] : memref<1x16x128xf32, #tpu.memory_space<vmem>>, vector<1x16x128xf32>
    %33 = vector.shape_cast %32 : vector<1x16x128xf32> to vector<16x128xf32>
    %34 = vector.shape_cast %31 : vector<16x128xf32> to vector<1x16x128xf32>
    tpu.vector_store %arg4[%c0_18, %c0_19, %c0_20], %34 {strides = array<i32>} : memref<1x16x128xf32, #tpu.memory_space<vmem>>, vector<1x16x128xf32>,
    %cst_21 = arith.constant dense<0.000000e+00> : vector<128xf32>
    %35 = vector.multi_reduction <add>, %31, %cst_21 [0] : vector<16x128xf32> to vector<128xf32>
    %36 = vector.shape_cast %35 : vector<128xf32> to vector<1x128xf32>
    %cst_22 = arith.constant 6.250000e-02 : f32
    %37 = vector.broadcast %cst_22 : f32 to vector<1x128xf32>
    %38 = arith.mulf %36, %37 : vector<1x128xf32>
    %39 = vector.broadcast %38 : vector<1x128xf32> to vector<16x128xf32>
    %40 = arith.subf %31, %39 : vector<16x128xf32>
    %41 = arith.mulf %40, %40 : vector<16x128xf32>
    %cst_23 = arith.constant dense<0.000000e+00> : vector<128xf32>
    %42 = vector.multi_reduction <add>, %41, %cst_23 [0] : vector<16x128xf32> to vector<128xf32>
    %43 = vector.shape_cast %42 : vector<128xf32> to vector<1x128xf32>
    %44 = tpu.concatenate %36, %43 in 0 : vector<1x128xf32>, vector<1x128xf32> -> vector<2x128xf32>
    %c0_24 = arith.constant 0 : index
    %c0_25 = arith.constant 0 : index
    %c0_26 = arith.constant 0 : index
    %45 = vector.load %arg5[%c0_24, %c0_25, %c0_26] : memref<1x2x128xf32, #tpu.memory_space<vmem>>, vector<1x2x128xf32>
    %46 = vector.shape_cast %45 : vector<1x2x128xf32> to vector<2x128xf32>
    %47 = vector.shape_cast %44 : vector<2x128xf32> to vector<1x2x128xf32>
    tpu.vector_store %arg5[%c0_24, %c0_25, %c0_26], %47 {strides = array<i32>} : memref<1x2x128xf32, #tpu.memory_space<vmem>>, vector<1x2x128xf32>,
    return
  }
  func.func @transform_0(%arg0: i32) -> (i32, i32, i32) {
    %c0_i32 = arith.constant 0 : i32
    %c0_i32_0 = arith.constant 0 : i32
    %c0_i32_1 = arith.constant 0 : i32
    return %arg0, %c0_i32, %c0_i32_0 : i32, i32, i32
  }
  func.func @transform_1(%arg0: i32) -> (i32, i32) {
    %c0_i32 = arith.constant 0 : i32
    %c0_i32_0 = arith.constant 0 : i32
    %c0_i32_1 = arith.constant 0 : i32
    return %c0_i32, %c0_i32_0 : i32, i32
  }
  func.func @transform_2(%arg0: i32) -> (i32, i32) {
    %c0_i32 = arith.constant 0 : i32
    %c0_i32_0 = arith.constant 0 : i32
    %c0_i32_1 = arith.constant 0 : i32
    return %c0_i32, %c0_i32_0 : i32, i32
  }
  func.func @transform_3(%arg0: i32) -> (i32, i32, i32) {
    %c0_i32 = arith.constant 0 : i32
    %c0_i32_0 = arith.constant 0 : i32
    %c0_i32_1 = arith.constant 0 : i32
    return %arg0, %c0_i32, %c0_i32_0 : i32, i32, i32
  }
  func.func @transform_4(%arg0: i32) -> (i32, i32, i32) {
    %c0_i32 = arith.constant 0 : i32
    %c0_i32_0 = arith.constant 0 : i32
    %c0_i32_1 = arith.constant 0 : i32
    return %arg0, %c0_i32, %c0_i32_0 : i32, i32, i32
  }
}

module attributes {stable_mosaic.version = 11 : i64} {
  func.func @_bn_relu_pwconv2_kernel(%arg0: i32, %arg1: memref<32x128xf32, #tpu.memory_space<vmem>>, %arg2: memref<1x128xf32, #tpu.memory_space<vmem>>, %arg3: memref<1x128xf32, #tpu.memory_space<vmem>>, %arg4: memref<128x128xf32, #tpu.memory_space<vmem>>, %arg5: memref<1x128xf32, #tpu.memory_space<vmem>>, %arg6: memref<32x128xf32, #tpu.memory_space<vmem>>) attributes {dimension_semantics = [#tpu.dimension_semantics<parallel>], iteration_bounds = array<i64: 1>, scalar_prefetch = 0 : i64, scratch_operands = 0 : i64, tpu.core_type = #tpu.core_type<tc>, window_params = [{transform_indices = @transform_0, window_bounds = array<i64: 32, 128>}, {pipeline_mode = #tpu.pipeline_mode<synchronous>, transform_indices = @transform_1, window_bounds = array<i64: 1, 128>}, {pipeline_mode = #tpu.pipeline_mode<synchronous>, transform_indices = @transform_2, window_bounds = array<i64: 1, 128>}, {pipeline_mode = #tpu.pipeline_mode<synchronous>, transform_indices = @transform_3, window_bounds = array<i64: 128, 128>}, {pipeline_mode = #tpu.pipeline_mode<synchronous>, transform_indices = @transform_4, window_bounds = array<i64: 1, 128>}, {transform_indices = @transform_5, window_bounds = array<i64: 32, 128>}]} {
    %c0 = arith.constant 0 : index
    %c0_0 = arith.constant 0 : index
    %0 = vector.load %arg1[%c0, %c0_0] : memref<32x128xf32, #tpu.memory_space<vmem>>, vector<32x128xf32>
    %c0_1 = arith.constant 0 : index
    %c0_2 = arith.constant 0 : index
    %1 = vector.load %arg2[%c0_1, %c0_2] : memref<1x128xf32, #tpu.memory_space<vmem>>, vector<1x128xf32>
    %2 = vector.broadcast %1 : vector<1x128xf32> to vector<32x128xf32>
    %3 = arith.mulf %0, %2 : vector<32x128xf32>
    %c0_3 = arith.constant 0 : index
    %c0_4 = arith.constant 0 : index
    %4 = vector.load %arg3[%c0_3, %c0_4] : memref<1x128xf32, #tpu.memory_space<vmem>>, vector<1x128xf32>
    %5 = vector.broadcast %4 : vector<1x128xf32> to vector<32x128xf32>
    %6 = arith.addf %3, %5 : vector<32x128xf32>
    %cst = arith.constant 0.000000e+00 : f32
    %7 = vector.broadcast %cst : f32 to vector<32x128xf32>
    %8 = arith.maximumf %6, %7 : vector<32x128xf32>
    %c0_5 = arith.constant 0 : index
    %c0_6 = arith.constant 0 : index
    %9 = vector.load %arg4[%c0_5, %c0_6] : memref<128x128xf32, #tpu.memory_space<vmem>>, vector<128x128xf32>
    %cst_7 = arith.constant dense<0.000000e+00> : vector<32x128xf32>
    %10 = tpu.matmul %8, %9, %cst_7 {dimension_numbers = #tpu.dot_dimension_numbers<[1], [0], [0], [1], [0, 0, 1, 1], [], []>} : vector<32x128xf32>, vector<128x128xf32>, vector<32x128xf32> -> vector<32x128xf32>
    %c0_8 = arith.constant 0 : index
    %c0_9 = arith.constant 0 : index
    %11 = vector.load %arg5[%c0_8, %c0_9] : memref<1x128xf32, #tpu.memory_space<vmem>>, vector<1x128xf32>
    %12 = vector.broadcast %11 : vector<1x128xf32> to vector<32x128xf32>
    %13 = arith.addf %10, %12 : vector<32x128xf32>
    %c0_10 = arith.constant 0 : index
    %c0_11 = arith.constant 0 : index
    %14 = vector.load %arg6[%c0_10, %c0_11] : memref<32x128xf32, #tpu.memory_space<vmem>>, vector<32x128xf32>
    tpu.vector_store %arg6[%c0_10, %c0_11], %13 {strides = array<i32>} : memref<32x128xf32, #tpu.memory_space<vmem>>, vector<32x128xf32>,
    return
  }
  func.func @transform_0(%arg0: i32) -> (i32, i32) {
    %c0_i32 = arith.constant 0 : i32
    %c0_i32_0 = arith.constant 0 : i32
    return %arg0, %c0_i32 : i32, i32
  }
  func.func @transform_1(%arg0: i32) -> (i32, i32) {
    %c0_i32 = arith.constant 0 : i32
    %c0_i32_0 = arith.constant 0 : i32
    %c0_i32_1 = arith.constant 0 : i32
    return %c0_i32, %c0_i32_0 : i32, i32
  }
  func.func @transform_2(%arg0: i32) -> (i32, i32) {
    %c0_i32 = arith.constant 0 : i32
    %c0_i32_0 = arith.constant 0 : i32
    %c0_i32_1 = arith.constant 0 : i32
    return %c0_i32, %c0_i32_0 : i32, i32
  }
  func.func @transform_3(%arg0: i32) -> (i32, i32) {
    %c0_i32 = arith.constant 0 : i32
    %c0_i32_0 = arith.constant 0 : i32
    %c0_i32_1 = arith.constant 0 : i32
    return %c0_i32, %c0_i32_0 : i32, i32
  }
  func.func @transform_4(%arg0: i32) -> (i32, i32) {
    %c0_i32 = arith.constant 0 : i32
    %c0_i32_0 = arith.constant 0 : i32
    %c0_i32_1 = arith.constant 0 : i32
    return %c0_i32, %c0_i32_0 : i32, i32
  }
  func.func @transform_5(%arg0: i32) -> (i32, i32) {
    %c0_i32 = arith.constant 0 : i32
    %c0_i32_0 = arith.constant 0 : i32
    return %arg0, %c0_i32 : i32, i32
  }
}

module attributes {stable_mosaic.version = 11 : i64} {
  func.func @_dwconv_stats_kernel(%arg0: i32, %arg1: memref<1x16x128xf32, #tpu.memory_space<vmem>>, %arg2: memref<3x128xf32, #tpu.memory_space<vmem>>, %arg3: memref<1x128xf32, #tpu.memory_space<vmem>>, %arg4: memref<1x16x128xf32, #tpu.memory_space<vmem>>, %arg5: memref<1x2x128xf32, #tpu.memory_space<vmem>>, %arg6: memref<25x128xf32, #tpu.memory_space<vmem>>) attributes {dimension_semantics = [#tpu.dimension_semantics<parallel>], iteration_bounds = array<i64: 2>, scalar_prefetch = 0 : i64, scratch_operands = 1 : i64, tpu.core_type = #tpu.core_type<tc>, window_params = [{transform_indices = @transform_0, window_bounds = array<i64: 1, 16, 128>}, {pipeline_mode = #tpu.pipeline_mode<synchronous>, transform_indices = @transform_1, window_bounds = array<i64: 3, 128>}, {pipeline_mode = #tpu.pipeline_mode<synchronous>, transform_indices = @transform_2, window_bounds = array<i64: 1, 128>}, {transform_indices = @transform_3, window_bounds = array<i64: 1, 16, 128>}, {transform_indices = @transform_4, window_bounds = array<i64: 1, 2, 128>}]} {
    %cst = arith.constant 0.000000e+00 : f32
    %0 = vector.broadcast %cst : f32 to vector<1x128xf32>
    %c7 = arith.constant 7 : index
    %c0 = arith.constant 0 : index
    %1 = vector.load %arg6[%c7, %c0] : memref<25x128xf32, #tpu.memory_space<vmem>>, vector<1x128xf32>
    tpu.vector_store %arg6[%c7, %c0], %0 {strides = array<i32>} : memref<25x128xf32, #tpu.memory_space<vmem>>, vector<1x128xf32>,
    %cst_0 = arith.constant 0.000000e+00 : f32
    %2 = vector.broadcast %cst_0 : f32 to vector<1x128xf32>
    %c24 = arith.constant 24 : index
    %c0_1 = arith.constant 0 : index
    %3 = vector.load %arg6[%c24, %c0_1] : memref<25x128xf32, #tpu.memory_space<vmem>>, vector<1x128xf32>
    tpu.vector_store %arg6[%c24, %c0_1], %2 {strides = array<i32>} : memref<25x128xf32, #tpu.memory_space<vmem>>, vector<1x128xf32>,
    %c0_2 = arith.constant 0 : index
    %c0_3 = arith.constant 0 : index
    %c0_4 = arith.constant 0 : index
    %4 = vector.load %arg1[%c0_2, %c0_3, %c0_4] : memref<1x16x128xf32, #tpu.memory_space<vmem>>, vector<1x16x128xf32>
    %5 = vector.shape_cast %4 : vector<1x16x128xf32> to vector<16x128xf32>
    %c8 = arith.constant 8 : index
    %c0_5 = arith.constant 0 : index
    %6 = vector.load %arg6[%c8, %c0_5] : memref<25x128xf32, #tpu.memory_space<vmem>>, vector<16x128xf32>
    tpu.vector_store %arg6[%c8, %c0_5], %5 {strides = array<i32>} : memref<25x128xf32, #tpu.memory_space<vmem>>, vector<16x128xf32>,
    %cst_6 = arith.constant 0.000000e+00 : f32
    %7 = vector.broadcast %cst_6 : f32 to vector<16x128xf32>
    %c0_7 = arith.constant 0 : index
    %c0_8 = arith.constant 0 : index
    %8 = vector.load %arg3[%c0_7, %c0_8] : memref<1x128xf32, #tpu.memory_space<vmem>>, vector<1x128xf32>
    %9 = vector.broadcast %8 : vector<1x128xf32> to vector<16x128xf32>
    %10 = arith.addf %7, %9 : vector<16x128xf32>
    %c7_9 = arith.constant 7 : index
    %c0_10 = arith.constant 0 : index
    %11 = vector.load %arg6[%c7_9, %c0_10] : memref<25x128xf32, #tpu.memory_space<vmem>>, vector<16x128xf32>
    %c0_11 = arith.constant 0 : index
    %c0_12 = arith.constant 0 : index
    %12 = vector.load %arg2[%c0_11, %c0_12] : memref<3x128xf32, #tpu.memory_space<vmem>>, vector<1x128xf32>
    %13 = vector.shape_cast %12 : vector<1x128xf32> to vector<128xf32>
    %14 = vector.shape_cast %13 : vector<128xf32> to vector<1x128xf32>
    %15 = vector.broadcast %14 : vector<1x128xf32> to vector<16x128xf32>
    %16 = arith.mulf %11, %15 : vector<16x128xf32>
    %17 = arith.addf %10, %16 : vector<16x128xf32>
    %c8_13 = arith.constant 8 : index
    %c0_14 = arith.constant 0 : index
    %18 = vector.load %arg6[%c8_13, %c0_14] : memref<25x128xf32, #tpu.memory_space<vmem>>, vector<16x128xf32>
    %c1 = arith.constant 1 : index
    %c0_15 = arith.constant 0 : index
    %19 = vector.load %arg2[%c1, %c0_15] : memref<3x128xf32, #tpu.memory_space<vmem>>, vector<1x128xf32>
    %20 = vector.shape_cast %19 : vector<1x128xf32> to vector<128xf32>
    %21 = vector.shape_cast %20 : vector<128xf32> to vector<1x128xf32>
    %22 = vector.broadcast %21 : vector<1x128xf32> to vector<16x128xf32>
    %23 = arith.mulf %18, %22 : vector<16x128xf32>
    %24 = arith.addf %17, %23 : vector<16x128xf32>
    %c9 = arith.constant 9 : index
    %c0_16 = arith.constant 0 : index
    %25 = vector.load %arg6[%c9, %c0_16] : memref<25x128xf32, #tpu.memory_space<vmem>>, vector<16x128xf32>
    %c2 = arith.constant 2 : index
    %c0_17 = arith.constant 0 : index
    %26 = vector.load %arg2[%c2, %c0_17] : memref<3x128xf32, #tpu.memory_space<vmem>>, vector<1x128xf32>
    %27 = vector.shape_cast %26 : vector<1x128xf32> to vector<128xf32>
    %28 = vector.shape_cast %27 : vector<128xf32> to vector<1x128xf32>
    %29 = vector.broadcast %28 : vector<1x128xf32> to vector<16x128xf32>
    %30 = arith.mulf %25, %29 : vector<16x128xf32>
    %31 = arith.addf %24, %30 : vector<16x128xf32>
    %c0_18 = arith.constant 0 : index
    %c0_19 = arith.constant 0 : index
    %c0_20 = arith.constant 0 : index
    %32 = vector.load %arg4[%c0_18, %c0_19, %c0_20] : memref<1x16x128xf32, #tpu.memory_space<vmem>>, vector<1x16x128xf32>
    %33 = vector.shape_cast %32 : vector<1x16x128xf32> to vector<16x128xf32>
    %34 = vector.shape_cast %31 : vector<16x128xf32> to vector<1x16x128xf32>
    tpu.vector_store %arg4[%c0_18, %c0_19, %c0_20], %34 {strides = array<i32>} : memref<1x16x128xf32, #tpu.memory_space<vmem>>, vector<1x16x128xf32>,
    %cst_21 = arith.constant dense<0.000000e+00> : vector<128xf32>
    %35 = vector.multi_reduction <add>, %31, %cst_21 [0] : vector<16x128xf32> to vector<128xf32>
    %36 = vector.shape_cast %35 : vector<128xf32> to vector<1x128xf32>
    %cst_22 = arith.constant 6.250000e-02 : f32
    %37 = vector.broadcast %cst_22 : f32 to vector<1x128xf32>
    %38 = arith.mulf %36, %37 : vector<1x128xf32>
    %39 = vector.broadcast %38 : vector<1x128xf32> to vector<16x128xf32>
    %40 = arith.subf %31, %39 : vector<16x128xf32>
    %41 = arith.mulf %40, %40 : vector<16x128xf32>
    %cst_23 = arith.constant dense<0.000000e+00> : vector<128xf32>
    %42 = vector.multi_reduction <add>, %41, %cst_23 [0] : vector<16x128xf32> to vector<128xf32>
    %43 = vector.shape_cast %42 : vector<128xf32> to vector<1x128xf32>
    %44 = tpu.concatenate %36, %43 in 0 : vector<1x128xf32>, vector<1x128xf32> -> vector<2x128xf32>
    %c0_24 = arith.constant 0 : index
    %c0_25 = arith.constant 0 : index
    %c0_26 = arith.constant 0 : index
    %45 = vector.load %arg5[%c0_24, %c0_25, %c0_26] : memref<1x2x128xf32, #tpu.memory_space<vmem>>, vector<1x2x128xf32>
    %46 = vector.shape_cast %45 : vector<1x2x128xf32> to vector<2x128xf32>
    %47 = vector.shape_cast %44 : vector<2x128xf32> to vector<1x2x128xf32>
    tpu.vector_store %arg5[%c0_24, %c0_25, %c0_26], %47 {strides = array<i32>} : memref<1x2x128xf32, #tpu.memory_space<vmem>>, vector<1x2x128xf32>,
    return
  }
  func.func @transform_0(%arg0: i32) -> (i32, i32, i32) {
    %c0_i32 = arith.constant 0 : i32
    %c0_i32_0 = arith.constant 0 : i32
    %c0_i32_1 = arith.constant 0 : i32
    return %arg0, %c0_i32, %c0_i32_0 : i32, i32, i32
  }
  func.func @transform_1(%arg0: i32) -> (i32, i32) {
    %c0_i32 = arith.constant 0 : i32
    %c0_i32_0 = arith.constant 0 : i32
    %c0_i32_1 = arith.constant 0 : i32
    return %c0_i32, %c0_i32_0 : i32, i32
  }
  func.func @transform_2(%arg0: i32) -> (i32, i32) {
    %c0_i32 = arith.constant 0 : i32
    %c0_i32_0 = arith.constant 0 : i32
    %c0_i32_1 = arith.constant 0 : i32
    return %c0_i32, %c0_i32_0 : i32, i32
  }
  func.func @transform_3(%arg0: i32) -> (i32, i32, i32) {
    %c0_i32 = arith.constant 0 : i32
    %c0_i32_0 = arith.constant 0 : i32
    %c0_i32_1 = arith.constant 0 : i32
    return %arg0, %c0_i32, %c0_i32_0 : i32, i32, i32
  }
  func.func @transform_4(%arg0: i32) -> (i32, i32, i32) {
    %c0_i32 = arith.constant 0 : i32
    %c0_i32_0 = arith.constant 0 : i32
    %c0_i32_1 = arith.constant 0 : i32
    return %arg0, %c0_i32, %c0_i32_0 : i32, i32, i32
  }
}

module attributes {stable_mosaic.version = 11 : i64} {
  func.func @_pwconv1_glu_kernel(%arg0: i32, %arg1: memref<32x128xf32, #tpu.memory_space<vmem>>, %arg2: memref<128x256xf32, #tpu.memory_space<vmem>>, %arg3: memref<1x256xf32, #tpu.memory_space<vmem>>, %arg4: memref<32x128xf32, #tpu.memory_space<vmem>>) attributes {dimension_semantics = [#tpu.dimension_semantics<parallel>], iteration_bounds = array<i64: 1>, scalar_prefetch = 0 : i64, scratch_operands = 0 : i64, tpu.core_type = #tpu.core_type<tc>, window_params = [{transform_indices = @transform_0, window_bounds = array<i64: 32, 128>}, {pipeline_mode = #tpu.pipeline_mode<synchronous>, transform_indices = @transform_1, window_bounds = array<i64: 128, 256>}, {pipeline_mode = #tpu.pipeline_mode<synchronous>, transform_indices = @transform_2, window_bounds = array<i64: 1, 256>}, {transform_indices = @transform_3, window_bounds = array<i64: 32, 128>}]} {
    %c0 = arith.constant 0 : index
    %c0_0 = arith.constant 0 : index
    %0 = vector.load %arg1[%c0, %c0_0] : memref<32x128xf32, #tpu.memory_space<vmem>>, vector<32x128xf32>
    %c0_1 = arith.constant 0 : index
    %c0_2 = arith.constant 0 : index
    %1 = vector.load %arg2[%c0_1, %c0_2] : memref<128x256xf32, #tpu.memory_space<vmem>>, vector<128x256xf32>
    %cst = arith.constant dense<0.000000e+00> : vector<32x256xf32>
    %2 = tpu.matmul %0, %1, %cst {dimension_numbers = #tpu.dot_dimension_numbers<[1], [0], [0], [1], [0, 0, 1, 1], [], []>} : vector<32x128xf32>, vector<128x256xf32>, vector<32x256xf32> -> vector<32x256xf32>
    %c0_3 = arith.constant 0 : index
    %c0_4 = arith.constant 0 : index
    %3 = vector.load %arg3[%c0_3, %c0_4] : memref<1x256xf32, #tpu.memory_space<vmem>>, vector<1x256xf32>
    %4 = vector.broadcast %3 : vector<1x256xf32> to vector<32x256xf32>
    %5 = arith.addf %2, %4 : vector<32x256xf32>
    %6 = vector.extract_strided_slice %5 {offsets = [0, 0], sizes = [32, 128], strides = [1, 1]} : vector<32x256xf32> to vector<32x128xf32>
    %7 = vector.extract_strided_slice %5 {offsets = [0, 128], sizes = [32, 128], strides = [1, 1]} : vector<32x256xf32> to vector<32x128xf32>
    %8 = arith.negf %7 : vector<32x128xf32>
    %9 = math.exp %8 : vector<32x128xf32>
    %cst_5 = arith.constant 1.000000e+00 : f32
    %10 = vector.broadcast %cst_5 : f32 to vector<32x128xf32>
    %11 = arith.addf %10, %9 : vector<32x128xf32>
    %12 = arith.divf %10, %11 : vector<32x128xf32>
    %13 = arith.mulf %6, %12 : vector<32x128xf32>
    %c0_6 = arith.constant 0 : index
    %c0_7 = arith.constant 0 : index
    %14 = vector.load %arg4[%c0_6, %c0_7] : memref<32x128xf32, #tpu.memory_space<vmem>>, vector<32x128xf32>
    tpu.vector_store %arg4[%c0_6, %c0_7], %13 {strides = array<i32>} : memref<32x128xf32, #tpu.memory_space<vmem>>, vector<32x128xf32>,
    return
  }
  func.func @transform_0(%arg0: i32) -> (i32, i32) {
    %c0_i32 = arith.constant 0 : i32
    %c0_i32_0 = arith.constant 0 : i32
    return %arg0, %c0_i32 : i32, i32
  }
  func.func @transform_1(%arg0: i32) -> (i32, i32) {
    %c0_i32 = arith.constant 0 : i32
    %c0_i32_0 = arith.constant 0 : i32
    %c0_i32_1 = arith.constant 0 : i32
    return %c0_i32, %c0_i32_0 : i32, i32
  }
  func.func @transform_2(%arg0: i32) -> (i32, i32) {
    %c0_i32 = arith.constant 0 : i32
    %c0_i32_0 = arith.constant 0 : i32
    %c0_i32_1 = arith.constant 0 : i32
    return %c0_i32, %c0_i32_0 : i32, i32
  }
  func.func @transform_3(%arg0: i32) -> (i32, i32) {
    %c0_i32 = arith.constant 0 : i32
    %c0_i32_0 = arith.constant 0 : i32
    return %arg0, %c0_i32 : i32, i32
  }
}

module attributes {stable_mosaic.version = 11 : i64} {
  func.func @_bn_relu_pwconv2_kernel(%arg0: i32, %arg1: memref<32x128xf32, #tpu.memory_space<vmem>>, %arg2: memref<1x128xf32, #tpu.memory_space<vmem>>, %arg3: memref<1x128xf32, #tpu.memory_space<vmem>>, %arg4: memref<128x128xf32, #tpu.memory_space<vmem>>, %arg5: memref<1x128xf32, #tpu.memory_space<vmem>>, %arg6: memref<32x128xf32, #tpu.memory_space<vmem>>) attributes {dimension_semantics = [#tpu.dimension_semantics<parallel>], iteration_bounds = array<i64: 1>, scalar_prefetch = 0 : i64, scratch_operands = 0 : i64, tpu.core_type = #tpu.core_type<tc>, window_params = [{transform_indices = @transform_0, window_bounds = array<i64: 32, 128>}, {pipeline_mode = #tpu.pipeline_mode<synchronous>, transform_indices = @transform_1, window_bounds = array<i64: 1, 128>}, {pipeline_mode = #tpu.pipeline_mode<synchronous>, transform_indices = @transform_2, window_bounds = array<i64: 1, 128>}, {pipeline_mode = #tpu.pipeline_mode<synchronous>, transform_indices = @transform_3, window_bounds = array<i64: 128, 128>}, {pipeline_mode = #tpu.pipeline_mode<synchronous>, transform_indices = @transform_4, window_bounds = array<i64: 1, 128>}, {transform_indices = @transform_5, window_bounds = array<i64: 32, 128>}]} {
    %c0 = arith.constant 0 : index
    %c0_0 = arith.constant 0 : index
    %0 = vector.load %arg1[%c0, %c0_0] : memref<32x128xf32, #tpu.memory_space<vmem>>, vector<32x128xf32>
    %c0_1 = arith.constant 0 : index
    %c0_2 = arith.constant 0 : index
    %1 = vector.load %arg2[%c0_1, %c0_2] : memref<1x128xf32, #tpu.memory_space<vmem>>, vector<1x128xf32>
    %2 = vector.broadcast %1 : vector<1x128xf32> to vector<32x128xf32>
    %3 = arith.mulf %0, %2 : vector<32x128xf32>
    %c0_3 = arith.constant 0 : index
    %c0_4 = arith.constant 0 : index
    %4 = vector.load %arg3[%c0_3, %c0_4] : memref<1x128xf32, #tpu.memory_space<vmem>>, vector<1x128xf32>
    %5 = vector.broadcast %4 : vector<1x128xf32> to vector<32x128xf32>
    %6 = arith.addf %3, %5 : vector<32x128xf32>
    %cst = arith.constant 0.000000e+00 : f32
    %7 = vector.broadcast %cst : f32 to vector<32x128xf32>
    %8 = arith.maximumf %6, %7 : vector<32x128xf32>
    %c0_5 = arith.constant 0 : index
    %c0_6 = arith.constant 0 : index
    %9 = vector.load %arg4[%c0_5, %c0_6] : memref<128x128xf32, #tpu.memory_space<vmem>>, vector<128x128xf32>
    %cst_7 = arith.constant dense<0.000000e+00> : vector<32x128xf32>
    %10 = tpu.matmul %8, %9, %cst_7 {dimension_numbers = #tpu.dot_dimension_numbers<[1], [0], [0], [1], [0, 0, 1, 1], [], []>} : vector<32x128xf32>, vector<128x128xf32>, vector<32x128xf32> -> vector<32x128xf32>
    %c0_8 = arith.constant 0 : index
    %c0_9 = arith.constant 0 : index
    %11 = vector.load %arg5[%c0_8, %c0_9] : memref<1x128xf32, #tpu.memory_space<vmem>>, vector<1x128xf32>
    %12 = vector.broadcast %11 : vector<1x128xf32> to vector<32x128xf32>
    %13 = arith.addf %10, %12 : vector<32x128xf32>
    %c0_10 = arith.constant 0 : index
    %c0_11 = arith.constant 0 : index
    %14 = vector.load %arg6[%c0_10, %c0_11] : memref<32x128xf32, #tpu.memory_space<vmem>>, vector<32x128xf32>
    tpu.vector_store %arg6[%c0_10, %c0_11], %13 {strides = array<i32>} : memref<32x128xf32, #tpu.memory_space<vmem>>, vector<32x128xf32>,
    return
  }
  func.func @transform_0(%arg0: i32) -> (i32, i32) {
    %c0_i32 = arith.constant 0 : i32
    %c0_i32_0 = arith.constant 0 : i32
    return %arg0, %c0_i32 : i32, i32
  }
  func.func @transform_1(%arg0: i32) -> (i32, i32) {
    %c0_i32 = arith.constant 0 : i32
    %c0_i32_0 = arith.constant 0 : i32
    %c0_i32_1 = arith.constant 0 : i32
    return %c0_i32, %c0_i32_0 : i32, i32
  }
  func.func @transform_2(%arg0: i32) -> (i32, i32) {
    %c0_i32 = arith.constant 0 : i32
    %c0_i32_0 = arith.constant 0 : i32
    %c0_i32_1 = arith.constant 0 : i32
    return %c0_i32, %c0_i32_0 : i32, i32
  }
  func.func @transform_3(%arg0: i32) -> (i32, i32) {
    %c0_i32 = arith.constant 0 : i32
    %c0_i32_0 = arith.constant 0 : i32
    %c0_i32_1 = arith.constant 0 : i32
    return %c0_i32, %c0_i32_0 : i32, i32
  }
  func.func @transform_4(%arg0: i32) -> (i32, i32) {
    %c0_i32 = arith.constant 0 : i32
    %c0_i32_0 = arith.constant 0 : i32
    %c0_i32_1 = arith.constant 0 : i32
    return %c0_i32, %c0_i32_0 : i32, i32
  }
  func.func @transform_5(%arg0: i32) -> (i32, i32) {
    %c0_i32 = arith.constant 0 : i32
    %c0_i32_0 = arith.constant 0 : i32
    return %arg0, %c0_i32 : i32, i32
  }
}

</mosaic_0001>

<bundles_post_ra>
// kernel: convolution_module.4
= control target key start
LH: loop header
LB: loop body
LE: loop exit
PB: predicated region body
PF: predicated region fallthrough
CT: control target
= control target key end

     0   :  { %s427_s15 = smov 0   ;;  %s463_s0 = inlined_call_operand.vmem [shape: f32[2,16,128], index: 0, kind: input, shape index: {}]   ;;  %s464_s1 = inlined_call_operand.vmem [shape: f32[3,128], index: 1, kind: input, shape index: {}]   ;;  %s465_s2 = inlined_call_operand.vmem [shape: f32[1,128], index: 2, kind: input, shape index: {}]   ;;  %s466_s3 = inlined_call_operand.vmem [shape: f32[2,16,128], index: 3, kind: output, shape index: {0}]   ;;  %s467_s4 = inlined_call_operand.vmem [shape: f32[2,2,128], index: 4, kind: output, shape index: {1}]  }
   0x1 LB: > { %s366_s16 = sadd.s32 4294967295, %s399_s15   ;;  %p370_p0 = scmp.ge.s32.totalorder %s399_s15, 1  ;;  %s399_s15 = sphi %s427_s15, %s15_s15  }
   0x2   : > { %p165_p1 = scmp.lt.s32.totalorder %s399_s15, 3 }
   0x4   : > { %p166_p2 = pnand %p370_p0, %p165_p1 }
   0x5   : > { %p195_p3 = scmp.lt.s32.totalorder (!%p166_p2), %s366_s16, 1  ;;  %v401_v0 = vmov (!%p166_p2), 0.0   ;;  %v377_v3 = vld [vmem:[%s464_s1] ss:$0 sm:$0xff] (!%p166_p2)  ;;  %v378_v4 = vld [vmem:[%s464_s1 + $0x1] ss:$0 sm:$0xff] (!%p166_p2) }
   0x6   : > { %169 = sbr.rel (%p166_p2) target bundleno = 69 (0x45), region = 32  ;;  %209 = vst [vmem:[#allocation2 + $0x7] sm:$0x1] (!%p166_p2), %v401_v0  ;;  %210 = vst [vmem:[#allocation2 + $0x18] sm:$0x1] (!%p166_p2), %v401_v0  ;;  %vm277_vm0 = vcmask (!%p166_p2), 1040384  }
   0x7   : > { %v376_v5 = vld [vmem:[%s465_s2] ss:$0 sm:$0xff] (!%p166_p2)  ;;  %v379_v13 = vld [vmem:[%s464_s1 + $0x2] ss:$0 sm:$0xff] (!%p166_p2) }
   0xd   : > { %s469_s16 = smov (!%p195_p3, %s366_s16), 1 }
   0xe   : > { %s382_s17 = sshll.u32 %s469_s16, 4  ;;  %s375_s6 = sshll.u32 %s469_s16, 1 }
   0xf   : > { %s199_s20 = scalar_lea.vmem %s463_s0, %s382_s17  ;;  %s204_s5 = scalar_lea.vmem %s466_s3, %s382_s17 }
  0x10   : > { %v211_v1 = vld [vmem:[%s199_s20] sm:$0xff]  ;;  %v212_v2 = vld [vmem:[%s199_s20 + $0x8] sm:$0xff]  ;;  %s208_s9 = scalar_lea.vmem %s467_s4, %s375_s6 }
  0x11   : > { %213 = vst [vmem:[#allocation2 + $0x8] sm:$0xff] %v211_v1  ;;  %214 = vst [vmem:[#allocation2 + $0x10] sm:$0xff] %v212_v2  ;;  %v241_v9 = vmul.f32 %v378_v4, %v211_v1  ;;  %v242_v11 = vmul.f32 %v378_v4, %v212_v2 }
  0x18   : > { %v223_v6 = vld [vmem:[#allocation2 + $0x7] sm:$0xff]  ;;  %v224_v7 = vld [vmem:[#allocation2 + $0xf] sm:$0xff] }
  0x19   : > { %v230_v8 = vmul.f32 %v377_v3, %v223_v6  ;;  %v231_v10 = vmul.f32 %v377_v3, %v224_v7  ;;  %v245_v12 = vld [vmem:[#allocation2 + $0x9] sm:$0xff]  ;;  %v246_v14 = vld [vmem:[#allocation2 + $0x11] sm:$0xff] }
  0x1a   : > { %v252_v18 = vmul.f32 %v379_v13, %v245_v12  ;;  %v253_v20 = vmul.f32 %v379_v13, %v246_v14 }
  0x1b   : > { %v232_v15 = vadd.f32 %v376_v5, %v230_v8  ;;  %v233_v16 = vadd.f32 %v376_v5, %v231_v10 }
  0x1d   : > { %v243_v17 = vadd.f32 %v241_v9, %v232_v15  ;;  %v244_v19 = vadd.f32 %v242_v11, %v233_v16 }
  0x1f   : > { %v254_v21 = vadd.f32 %v252_v18, %v243_v17  ;;  %v255_v22 = vadd.f32 %v253_v20, %v244_v19 }
  0x21   : > { %256 = vst [vmem:[%s204_s5] sm:$0xff] %v254_v21  ;;  %257 = vst [vmem:[%s204_s5 + $0x8] sm:$0xff] %v255_v22  ;;  %v258_v23 = vadd.f32 %v255_v22, %v254_v21 }
  0x23   : > { %v259_v24 = vrot.slane %v258_v23, 4 }
  0x25   : > { %v260_v25 = vadd.f32 %v259_v24, %v258_v23 }
  0x27   : > { %v261_v26 = vrot.slane %v260_v25, 2 }
  0x29   : > { %v262_v27 = vadd.f32 %v261_v26, %v260_v25 }
  0x2b   : > { %v263_v28 = vrot.slane %v262_v27, 1 }
  0x2d   : > { %v264_v29 = vadd.f32 %v263_v28, %v262_v27 }
  0x2f   : > { %v265_v30 = vmul.f32 0.0625, %v264_v29 }
  0x31   : > { %v266_v31 = vsub.f32 %v254_v21, %v265_v30  ;;  %v267_v32 = vsub.f32 %v255_v22, %v265_v30 }
  0x33   : > { %v268_v33 = vmul.f32 %v266_v31, %v266_v31  ;;  %v269_v34 = vmul.f32 %v267_v32, %v267_v32 }
  0x35   : > { %v270_v35 = vadd.f32 %v269_v34, %v268_v33 }
  0x37   : > { %v271_v36 = vrot.slane %v270_v35, 4 }
  0x39   : > { %v272_v37 = vadd.f32 %v271_v36, %v270_v35 }
  0x3b   : > { %v273_v38 = vrot.slane %v272_v37, 2 }
  0x3d   : > { %v274_v39 = vadd.f32 %v273_v38, %v272_v37 }
  0x3f   : > { %v275_v40 = vrot.slane %v274_v39, 1 }
  0x41   : > { %v276_v41 = vadd.f32 %v275_v40, %v274_v39 }
  0x43   : > { %v278_v42 = vsel %vm277_vm0, %v264_v29, %v276_v41 }
  0x44   : > { %279 = vst [vmem:[%s208_s9] sm:$0x3] %v278_v42 }
  0x45 PF: > { %s15_s15 = sadd.s32 1, %s399_s15  }
  0x46   : > { %p12_p4 = scmp.ge.s32.totalorder %s15_s15, 4  }
  0x48   :  { %14 = sbr.rel (!%p12_p4) target bundleno = 1 (0x1), region = 74 }

// kernel: convolution_module.5
= control target key start
LH: loop header
LB: loop body
LE: loop exit
PB: predicated region body
PF: predicated region fallthrough
CT: control target
= control target key end

     0   :  { %s386_s3 = inlined_call_operand.vmem [shape: f32[128,128], index: 3, kind: input, shape index: {}]   ;;  %s387_s0 = inlined_call_operand.vmem [shape: f32[32,128], index: 0, kind: input, shape index: {}]   ;;  %s388_s1 = inlined_call_operand.vmem [shape: f32[1,128], index: 1, kind: input, shape index: {}]   ;;  %s389_s2 = inlined_call_operand.vmem [shape: f32[1,128], index: 2, kind: input, shape index: {}]   ;;  %s390_s4 = inlined_call_operand.vmem [shape: f32[1,128], index: 4, kind: input, shape index: {}]   ;;  %s391_s5 = inlined_call_operand.vmem [shape: f32[32,128], index: 5, kind: output, shape index: {}]  }
   0x1   :  { %v50_v0 = vld [vmem:[%s386_s3] sm:$0xff]  ;;  %v51_v1 = vld [vmem:[%s386_s3 + $0x8] sm:$0xff]  ;;  %v52_v2 = vld [vmem:[%s386_s3 + $0x10] sm:$0xff] }
   0x2   :  { %v227_v3 = vpack.c.bf16 %v51_v1, %v50_v0  ;;  %v53_v4 = vld [vmem:[%s386_s3 + $0x18] sm:$0xff]  ;;  %v54_v6 = vld [vmem:[%s386_s3 + $0x20] sm:$0xff]  ;;  %v55_v7 = vld [vmem:[%s386_s3 + $0x28] sm:$0xff] }
   0x3   :  { %v231_v5 = vpack.c.bf16 %v53_v4, %v52_v2  ;;  %v235_v8 = vpack.c.bf16 %v55_v7, %v54_v6  ;;  %v56_v9 = vld [vmem:[%s386_s3 + $0x30] sm:$0xff]  ;;  %v20_v10 = vld [vmem:[%s387_s0] sm:$0xff]  ;;  %v57_v12 = vld [vmem:[%s386_s3 + $0x38] sm:$0xff] }
   0x4   :  { %228 = vmatprep.subr.bf16.mxu0 %v227_v3  ;;  %259 = vmatprep.subr.bf16.mxu1 %v227_v3  ;;  %v166_v11 = vld [vmem:[%s388_s1] ss:$0 sm:$0xff]  ;;  %v22_v15 = vld [vmem:[%s387_s0 + $0x10] sm:$0xff]  ;;  %v239_v18 = vpack.c.bf16 %v57_v12, %v56_v9  ;;  %v59_v21 = vld [vmem:[%s386_s3 + $0x48] sm:$0xff] }
   0x5   :  { %230 = vmatpush3.bf16.msra.mxu0 %v227_v3  ;;  %267 = vmatpush3.bf16.msra.mxu1 %v227_v3  ;;  %v31_v13 = vmul.f32 %v166_v11, %v20_v10  ;;  %v167_v14 = vld [vmem:[%s389_s2] ss:$0 sm:$0xff]  ;;  %v33_v16 = vmul.f32 %v166_v11, %v22_v15  ;;  %v60_v25 = vld [vmem:[%s386_s3 + $0x50] sm:$0xff]  ;;  %v61_v26 = vld [vmem:[%s386_s3 + $0x58] sm:$0xff] }
   0x6   :  { %232 = vmatprep.subr.bf16.mxu0 %v231_v5  ;;  %260 = vmatprep.subr.bf16.mxu1 %v231_v5  ;;  %v58_v20 = vld [vmem:[%s386_s3 + $0x40] sm:$0xff]  ;;  %v247_v27 = vpack.c.bf16 %v61_v26, %v60_v25  ;;  %v63_v29 = vld [vmem:[%s386_s3 + $0x68] sm:$0xff]  ;;  %v23_v31 = vld [vmem:[%s387_s0 + $0x18] sm:$0xff] }
   0x7   :  { %v42_v17 = vadd.f32 %v167_v14, %v31_v13  ;;  %v44_v19 = vadd.f32 %v167_v14, %v33_v16  ;;  %v243_v24 = vpack.c.bf16 %v59_v21, %v58_v20  ;;  %v62_v28 = vld [vmem:[%s386_s3 + $0x60] sm:$0xff]  ;;  %v21_v30 = vld [vmem:[%s387_s0 + $0x8] sm:$0xff]  ;;  %v64_v33 = vld [vmem:[%s386_s3 + $0x70] sm:$0xff]  ;;  %v34_v36 = vmul.f32 %v166_v11, %v23_v31 }
   0x8   :  { %v251_v32 = vpack.c.bf16 %v63_v29, %v62_v28  ;;  %v65_v34 = vld [vmem:[%s386_s3 + $0x78] sm:$0xff]  ;;  %v32_v35 = vmul.f32 %v166_v11, %v21_v30  ;;  %v168_v42 = vld [vmem:[%s390_s4] ss:$0 sm:$0xff] }
   0x9   :  { %234 = vmatpush3.bf16.msra.mxu0 %v231_v5  ;;  %268 = vmatpush3.bf16.msra.mxu1 %v231_v5  ;;  %v46_v22 = vmax.f32 %v42_v17, 0.0  ;;  %v48_v23 = vmax.f32 %v44_v19, 0.0  ;;  %v255_v37 = vpack.c.bf16 %v65_v34, %v64_v33  ;;  %v45_v39 = vadd.f32 %v167_v14, %v34_v36 }
   0xa   :  { %236 = vmatprep.subr.bf16.mxu0 %v235_v8  ;;  %261 = vmatprep.subr.bf16.mxu1 %v235_v8  ;;  %v43_v38 = vadd.f32 %v167_v14, %v32_v35 }
   0xb   :  { %221 = vmatprep.mubr.f32.mxu0 %v46_v22  ;;  %224 = vmatprep.mubr.f32.mxu1 %v48_v23  ;;  %v49_v41 = vmax.f32 %v45_v39, 0.0 }
   0xc   :  { %v47_v40 = vmax.f32 %v43_v38, 0.0 }
   0xd   :  { %238 = vmatpush3.bf16.msra.mxu0 %v235_v8  ;;  %269 = vmatpush3.bf16.msra.mxu1 %v235_v8 }
   0xe   :  { %240 = vmatprep.subr.bf16.mxu0 %v239_v18  ;;  %262 = vmatprep.subr.bf16.mxu1 %v239_v18 }
  0x11   :  { %242 = vmatpush3.bf16.msra.mxu0 %v239_v18  ;;  %270 = vmatpush3.bf16.msra.mxu1 %v239_v18 }
  0x12   :  { %244 = vmatprep.subr.bf16.mxu0 %v243_v24  ;;  %263 = vmatprep.subr.bf16.mxu1 %v243_v24 }
  0x15   :  { %246 = vmatpush3.bf16.msra.mxu0 %v243_v24  ;;  %271 = vmatpush3.bf16.msra.mxu1 %v243_v24 }
  0x16   :  { %248 = vmatprep.subr.bf16.mxu0 %v247_v27  ;;  %264 = vmatprep.subr.bf16.mxu1 %v247_v27 }
  0x19   :  { %250 = vmatpush3.bf16.msra.mxu0 %v247_v27  ;;  %272 = vmatpush3.bf16.msra.mxu1 %v247_v27 }
  0x1a   :  { %252 = vmatprep.subr.bf16.mxu0 %v251_v32  ;;  %265 = vmatprep.subr.bf16.mxu1 %v251_v32 }
  0x1d   :  { %254 = vmatpush3.bf16.msra.mxu0 %v251_v32  ;;  %273 = vmatpush3.bf16.msra.mxu1 %v251_v32 }
  0x1e   :  { %256 = vmatprep.subr.bf16.mxu0 %v255_v37  ;;  %266 = vmatprep.subr.bf16.mxu1 %v255_v37 }
  0x21   :  { %258 = vmatpush3.bf16.msra.mxu0 %v255_v37  ;;  %274 = vmatpush3.bf16.msra.mxu1 %v255_v37 }
  0x24   :  { %222 = vmatmul.mubr.f32.vlgmr.msra.gmra.mrb[0].mxu0 %v47_v40  ;;  %225 = vmatmul.mubr.f32.vlgmr.msra.gmra.mrb[0].mxu1 %v49_v41 }
  0xf7   :  { %v223_v43 = vpop.f32.mrb[0].mxu0  ;;  %v226_v44 = vpop.f32.mrb[0].mxu1 }
  0xf8   :  { %v145_v45 = vadd.f32 %v223_v43, %v168_v42  ;;  %v155_v46 = vadd.f32 %v226_v44, %v168_v42  ;;  %v139_v47 = vpop.f32.mrb[1].mxu0  ;;  %v149_v48 = vpop.f32.mrb[1].mxu1 }
  0xf9   :  { %v140_v49 = vadd.f32 %v168_v42, %v139_v47  ;;  %v150_v50 = vadd.f32 %v168_v42, %v149_v48 }
  0xfa   :  { %159 = vst [vmem:[%s391_s5 + $0x8] sm:$0xff] %v145_v45  ;;  %161 = vst [vmem:[%s391_s5 + $0x18] sm:$0xff] %v155_v46 }
  0xfb   :  { %158 = vst [vmem:[%s391_s5] sm:$0xff] %v140_v49  ;;  %160 = vst [vmem:[%s391_s5 + $0x10] sm:$0xff] %v150_v50 }

// kernel: convolution_module.3
= control target key start
LH: loop header
LB: loop body
LE: loop exit
PB: predicated region body
PF: predicated region fallthrough
CT: control target
= control target key end

     0   :  { %v256_v3 = vmov 0.0   ;;  %v52_v53 = vlaneseq  ;;  %s404_s1 = inlined_call_operand.vmem [shape: f32[128,256], index: 1, kind: input, shape index: {}]   ;;  %s405_s0 = inlined_call_operand.vmem [shape: f32[32,128], index: 0, kind: input, shape index: {}]   ;;  %s406_s2 = inlined_call_operand.vmem [shape: f32[1,256], index: 2, kind: input, shape index: {}]   ;;  %s407_s3 = inlined_call_operand.vmem [shape: f32[32,128], index: 3, kind: output, shape index: {}]  }
   0x1   :  { %v19_v0 = vld [vmem:[%s404_s1 + $0x8] sm:$0xff]  ;;  %v21_v1 = vld [vmem:[%s404_s1 + $0x18] sm:$0xff]  ;;  %v18_v2 = vld [vmem:[%s404_s1] sm:$0xff]  ;;  %126 = vmatprep.mubr.f32.mxu0 %v256_v3  ;;  %138 = vmatprep.mubr.f32.mxu1 %v256_v3 }
   0x2   :  { %v191_v4 = vpack.c.bf16 %v21_v1, %v19_v0  ;;  %v20_v5 = vld [vmem:[%s404_s1 + $0x10] sm:$0xff]  ;;  %v23_v6 = vld [vmem:[%s404_s1 + $0x28] sm:$0xff]  ;;  %v25_v7 = vld [vmem:[%s404_s1 + $0x38] sm:$0xff]  ;;  %v53_v54 = vshrl.u32 %v52_v53, 7 }
   0x3   :  { %v193_v8 = vpack.c.bf16 %v20_v5, %v18_v2  ;;  %v195_v9 = vpack.c.bf16 %v25_v7, %v23_v6  ;;  %v22_v10 = vld [vmem:[%s404_s1 + $0x20] sm:$0xff]  ;;  %v24_v11 = vld [vmem:[%s404_s1 + $0x30] sm:$0xff]  ;;  %v27_v12 = vld [vmem:[%s404_s1 + $0x48] sm:$0xff] }
   0x4   :  { %192 = vmatprep.subr.bf16.mxu0 %v191_v4  ;;  %223 = vmatprep.subr.bf16.mxu1 %v191_v4  ;;  %v29_v13 = vld [vmem:[%s404_s1 + $0x58] sm:$0xff]  ;;  %v197_v14 = vpack.c.bf16 %v24_v11, %v22_v10  ;;  %v26_v16 = vld [vmem:[%s404_s1 + $0x40] sm:$0xff]  ;;  %v28_v17 = vld [vmem:[%s404_s1 + $0x50] sm:$0xff]  ;;  %v58_v55 = vsub.s32 1, %v53_v54 }
   0x5   :  { %194 = vmatpush1.bf16.msra.mxu0 %v193_v8  ;;  %231 = vmatpush1.bf16.msra.mxu1 %v193_v8  ;;  %v199_v15 = vpack.c.bf16 %v29_v13, %v27_v12  ;;  %v31_v18 = vld [vmem:[%s404_s1 + $0x68] sm:$0xff]  ;;  %v33_v19 = vld [vmem:[%s404_s1 + $0x78] sm:$0xff]  ;;  %v201_v20 = vpack.c.bf16 %v28_v17, %v26_v16  ;;  %v30_v22 = vld [vmem:[%s404_s1 + $0x60] sm:$0xff] }
   0x6   :  { %196 = vmatprep.subr.bf16.mxu0 %v195_v9  ;;  %224 = vmatprep.subr.bf16.mxu1 %v195_v9  ;;  %v203_v21 = vpack.c.bf16 %v33_v19, %v31_v18  ;;  %v32_v23 = vld [vmem:[%s404_s1 + $0x70] sm:$0xff]  ;;  %v35_v24 = vld [vmem:[%s404_s1 + $0x88] sm:$0xff]  ;;  %v37_v25 = vld [vmem:[%s404_s1 + $0x98] sm:$0xff] }
   0x7   :  { %v205_v26 = vpack.c.bf16 %v32_v23, %v30_v22  ;;  %v207_v27 = vpack.c.bf16 %v37_v25, %v35_v24  ;;  %v34_v28 = vld [vmem:[%s404_s1 + $0x80] sm:$0xff]  ;;  %v36_v29 = vld [vmem:[%s404_s1 + $0x90] sm:$0xff]  ;;  %v39_v30 = vld [vmem:[%s404_s1 + $0xa8] sm:$0xff] }
   0x8   :  { %v41_v31 = vld [vmem:[%s404_s1 + $0xb8] sm:$0xff]  ;;  %v209_v32 = vpack.c.bf16 %v36_v29, %v34_v28  ;;  %v38_v34 = vld [vmem:[%s404_s1 + $0xa0] sm:$0xff]  ;;  %v40_v35 = vld [vmem:[%s404_s1 + $0xb0] sm:$0xff] }
   0x9   :  { %198 = vmatpush1.bf16.msra.mxu0 %v197_v14  ;;  %232 = vmatpush1.bf16.msra.mxu1 %v197_v14  ;;  %v211_v33 = vpack.c.bf16 %v41_v31, %v39_v30  ;;  %v43_v36 = vld [vmem:[%s404_s1 + $0xc8] sm:$0xff]  ;;  %v45_v37 = vld [vmem:[%s404_s1 + $0xd8] sm:$0xff]  ;;  %v213_v38 = vpack.c.bf16 %v40_v35, %v38_v34  ;;  %v42_v40 = vld [vmem:[%s404_s1 + $0xc0] sm:$0xff] }
   0xa   :  { %200 = vmatprep.subr.bf16.mxu0 %v199_v15  ;;  %225 = vmatprep.subr.bf16.mxu1 %v199_v15  ;;  %v215_v39 = vpack.c.bf16 %v45_v37, %v43_v36  ;;  %v44_v41 = vld [vmem:[%s404_s1 + $0xd0] sm:$0xff]  ;;  %v47_v42 = vld [vmem:[%s404_s1 + $0xe8] sm:$0xff]  ;;  %v49_v43 = vld [vmem:[%s404_s1 + $0xf8] sm:$0xff]  ;;  %v54_v15 = vsub.s32 0, %v53_v54 }
   0xb   :  { %v217_v44 = vpack.c.bf16 %v44_v41, %v42_v40  ;;  %v219_v45 = vpack.c.bf16 %v49_v43, %v47_v42  ;;  %v46_v46 = vld [vmem:[%s404_s1 + $0xe0] sm:$0xff]  ;;  %v48_v47 = vld [vmem:[%s404_s1 + $0xf0] sm:$0xff]  ;;  %v15_v51 = vld [vmem:[%s405_s0 + $0x8] sm:$0xff] }
   0xc   :  { %v221_v48 = vpack.c.bf16 %v48_v47, %v46_v46  ;;  %v14_v49 = vld [vmem:[%s405_s0] sm:$0xff]  ;;  %v16_v50 = vld [vmem:[%s405_s0 + $0x10] sm:$0xff]  ;;  %v17_v52 = vld [vmem:[%s405_s0 + $0x18] sm:$0xff] }
   0xd   :  { %202 = vmatpush1.bf16.msra.mxu0 %v201_v20  ;;  %233 = vmatpush1.bf16.msra.mxu1 %v201_v20  ;;  %v50_v56 = vld [vmem:[%s406_s2] sm:$0x3] }
   0xe   :  { %204 = vmatprep.subr.bf16.mxu0 %v203_v21  ;;  %226 = vmatprep.subr.bf16.mxu1 %v203_v21  ;;  %v59_v57 = vrot.slane %v50_v56, %v58_v55  ;;  %v55_v19 = vrot.slane %v50_v56, %v54_v15 }
  0x11   :  { %206 = vmatpush1.bf16.msra.mxu0 %v205_v26  ;;  %234 = vmatpush1.bf16.msra.mxu1 %v205_v26 }
  0x12   :  { %208 = vmatprep.subr.bf16.mxu0 %v207_v27  ;;  %227 = vmatprep.subr.bf16.mxu1 %v207_v27 }
  0x15   :  { %210 = vmatpush1.bf16.msra.mxu0 %v209_v32  ;;  %235 = vmatpush1.bf16.msra.mxu1 %v209_v32 }
  0x16   :  { %212 = vmatprep.subr.bf16.mxu0 %v211_v33  ;;  %228 = vmatprep.subr.bf16.mxu1 %v211_v33 }
  0x19   :  { %214 = vmatpush1.bf16.msra.mxu0 %v213_v38  ;;  %236 = vmatpush1.bf16.msra.mxu1 %v213_v38 }
  0x1a   :  { %216 = vmatprep.subr.bf16.mxu0 %v215_v39  ;;  %229 = vmatprep.subr.bf16.mxu1 %v215_v39 }
  0x1d   :  { %218 = vmatpush1.bf16.msra.mxu0 %v217_v44  ;;  %237 = vmatpush1.bf16.msra.mxu1 %v217_v44 }
  0x1e   :  { %220 = vmatprep.subr.bf16.mxu0 %v219_v45  ;;  %230 = vmatprep.subr.bf16.mxu1 %v219_v45 }
  0x21   :  { %222 = vmatpush1.bf16.msra.mxu0 %v221_v48  ;;  %238 = vmatpush1.bf16.msra.mxu1 %v221_v48 }
  0x24   :  { %127 = vmatmul.mubr.f32.vlgmr.msra.gmra.mrb[0].mxu0 %v14_v49  ;;  %139 = vmatmul.mubr.f32.vlgmr.msra.gmra.mrb[0].mxu1 %v16_v50 }
  0x25   :  { %132 = vmatprep.mubr.f32.mxu0 %v256_v3  ;;  %144 = vmatprep.mubr.f32.mxu1 %v256_v3 }
  0x28   :  { %133 = vmatmul.mubr.f32.gmra.mrb[2].mxu0 %v15_v51  ;;  %145 = vmatmul.mubr.f32.gmra.mrb[2].mxu1 %v17_v52 }
  0xf7   :  { %v128_v58 = vpop.f32.mrb[0].mxu0  ;;  %v140_v59 = vpop.f32.mrb[0].mxu1 }
  0xf8   :  { %v130_v60 = vpop.f32.mrb[1].mxu0  ;;  %v142_v61 = vpop.f32.mrb[1].mxu1  ;;  %v129_v20 = vadd.f32 %v128_v58, %v55_v19  ;;  %v141_v22 = vadd.f32 %v140_v59, %v55_v19 }
  0xf9   :  { %v131_v62 = vadd.f32 %v130_v60, %v59_v57  ;;  %v143_v63 = vadd.f32 %v142_v61, %v59_v57 }
  0xfb   :  { %v187_v0 = vmul.f32 -1.442695, %v131_v62  ;;  %v189_v1 = vmul.f32 -1.442695, %v143_v63  ;;  %v134_v2 = vpop.f32.mrb[2].mxu0  ;;  %v146_v3 = vpop.f32.mrb[2].mxu1 }
  0xfc   :  { %v136_v4 = vpop.f32.mrb[3].mxu0  ;;  %v148_v5 = vpop.f32.mrb[3].mxu1  ;;  %v135_v26 = vadd.f32 %v134_v2, %v55_v19  ;;  %v147_v28 = vadd.f32 %v146_v3, %v55_v19 }
  0xfd   :  { %240 = vpow2.f32 %v187_v0  ;;  %v137_v6 = vadd.f32 %v136_v4, %v59_v57  ;;  %v149_v7 = vadd.f32 %v148_v5, %v59_v57 }
  0xfe   :  { %242 = vpow2.f32 %v189_v1 }
  0xff   :  { %v188_v8 = vmul.f32 -1.442695, %v137_v6  ;;  %v190_v9 = vmul.f32 -1.442695, %v149_v7 }
 0x101   :  { %244 = vpow2.f32 %v188_v8 }
 0x102   :  { %246 = vpow2.f32 %v190_v9 }
 0x107   :  { %v241_v10 = vpop.eup %240 }
 0x108   :  { %v243_v11 = vpop.eup %242  ;;  %v163_v12 = vadd.f32 1.0, %v241_v10 }
 0x109   :  { %v165_v13 = vadd.f32 1.0, %v243_v11 }
 0x10a   :  { %248 = vrcp.f32 %v163_v12 }
 0x10b   :  { %v245_v14 = vpop.eup %244  ;;  %250 = vrcp.f32 %v165_v13 }
 0x10c   :  { %v247_v16 = vpop.eup %246  ;;  %v164_v17 = vadd.f32 1.0, %v245_v14 }
 0x10d   :  { %v166_v18 = vadd.f32 1.0, %v247_v16 }
 0x10e   :  { %252 = vrcp.f32 %v164_v17 }
 0x10f   :  { %254 = vrcp.f32 %v166_v18 }
 0x114   :  { %v249_v21 = vpop.eup %248 }
 0x115   :  { %v251_v23 = vpop.eup %250  ;;  %v175_v24 = vmul.f32 %v249_v21, %v129_v20 }
 0x116   :  { %v177_v25 = vmul.f32 %v251_v23, %v141_v22 }
 0x117   :  { %179 = vst [vmem:[%s407_s3] sm:$0xff] %v175_v24 }
 0x118   :  { %v253_v27 = vpop.eup %252  ;;  %181 = vst [vmem:[%s407_s3 + $0x10] sm:$0xff] %v177_v25 }
 0x119   :  { %v255_v29 = vpop.eup %254  ;;  %v176_v30 = vmul.f32 %v253_v27, %v135_v26 }
 0x11a   :  { %v178_v31 = vmul.f32 %v255_v29, %v147_v28 }
 0x11b   :  { %180 = vst [vmem:[%s407_s3 + $0x8] sm:$0xff] %v176_v30 }
 0x11c   :  { %182 = vst [vmem:[%s407_s3 + $0x18] sm:$0xff] %v178_v31 }

// kernel: convolution_module.4
= control target key start
LH: loop header
LB: loop body
LE: loop exit
PB: predicated region body
PF: predicated region fallthrough
CT: control target
= control target key end

     0   :  { %s427_s15 = smov 0   ;;  %s463_s0 = inlined_call_operand.vmem [shape: f32[2,16,128], index: 0, kind: input, shape index: {}]   ;;  %s464_s1 = inlined_call_operand.vmem [shape: f32[3,128], index: 1, kind: input, shape index: {}]   ;;  %s465_s2 = inlined_call_operand.vmem [shape: f32[1,128], index: 2, kind: input, shape index: {}]   ;;  %s466_s3 = inlined_call_operand.vmem [shape: f32[2,16,128], index: 3, kind: output, shape index: {0}]   ;;  %s467_s4 = inlined_call_operand.vmem [shape: f32[2,2,128], index: 4, kind: output, shape index: {1}]  }
   0x1 LB: > { %s366_s16 = sadd.s32 4294967295, %s399_s15   ;;  %p370_p0 = scmp.ge.s32.totalorder %s399_s15, 1  ;;  %s399_s15 = sphi %s427_s15, %s15_s15  }
   0x2   : > { %p165_p1 = scmp.lt.s32.totalorder %s399_s15, 3 }
   0x4   : > { %p166_p2 = pnand %p370_p0, %p165_p1 }
   0x5   : > { %p195_p3 = scmp.lt.s32.totalorder (!%p166_p2), %s366_s16, 1  ;;  %v401_v0 = vmov (!%p166_p2), 0.0   ;;  %v377_v3 = vld [vmem:[%s464_s1] ss:$0 sm:$0xff] (!%p166_p2)  ;;  %v378_v4 = vld [vmem:[%s464_s1 + $0x1] ss:$0 sm:$0xff] (!%p166_p2) }
   0x6   : > { %169 = sbr.rel (%p166_p2) target bundleno = 69 (0x45), region = 32  ;;  %209 = vst [vmem:[#allocation2 + $0x7] sm:$0x1] (!%p166_p2), %v401_v0  ;;  %210 = vst [vmem:[#allocation2 + $0x18] sm:$0x1] (!%p166_p2), %v401_v0  ;;  %vm277_vm0 = vcmask (!%p166_p2), 1040384  }
   0x7   : > { %v376_v5 = vld [vmem:[%s465_s2] ss:$0 sm:$0xff] (!%p166_p2)  ;;  %v379_v13 = vld [vmem:[%s464_s1 + $0x2] ss:$0 sm:$0xff] (!%p166_p2) }
   0xd   : > { %s469_s16 = smov (!%p195_p3, %s366_s16), 1 }
   0xe   : > { %s382_s17 = sshll.u32 %s469_s16, 4  ;;  %s375_s6 = sshll.u32 %s469_s16, 1 }
   0xf   : > { %s199_s20 = scalar_lea.vmem %s463_s0, %s382_s17  ;;  %s204_s5 = scalar_lea.vmem %s466_s3, %s382_s17 }
  0x10   : > { %v211_v1 = vld [vmem:[%s199_s20] sm:$0xff]  ;;  %v212_v2 = vld [vmem:[%s199_s20 + $0x8] sm:$0xff]  ;;  %s208_s9 = scalar_lea.vmem %s467_s4, %s375_s6 }
  0x11   : > { %213 = vst [vmem:[#allocation2 + $0x8] sm:$0xff] %v211_v1  ;;  %214 = vst [vmem:[#allocation2 + $0x10] sm:$0xff] %v212_v2  ;;  %v241_v9 = vmul.f32 %v378_v4, %v211_v1  ;;  %v242_v11 = vmul.f32 %v378_v4, %v212_v2 }
  0x18   : > { %v223_v6 = vld [vmem:[#allocation2 + $0x7] sm:$0xff]  ;;  %v224_v7 = vld [vmem:[#allocation2 + $0xf] sm:$0xff] }
  0x19   : > { %v230_v8 = vmul.f32 %v377_v3, %v223_v6  ;;  %v231_v10 = vmul.f32 %v377_v3, %v224_v7  ;;  %v245_v12 = vld [vmem:[#allocation2 + $0x9] sm:$0xff]  ;;  %v246_v14 = vld [vmem:[#allocation2 + $0x11] sm:$0xff] }
  0x1a   : > { %v252_v18 = vmul.f32 %v379_v13, %v245_v12  ;;  %v253_v20 = vmul.f32 %v379_v13, %v246_v14 }
  0x1b   : > { %v232_v15 = vadd.f32 %v376_v5, %v230_v8  ;;  %v233_v16 = vadd.f32 %v376_v5, %v231_v10 }
  0x1d   : > { %v243_v17 = vadd.f32 %v241_v9, %v232_v15  ;;  %v244_v19 = vadd.f32 %v242_v11, %v233_v16 }
  0x1f   : > { %v254_v21 = vadd.f32 %v252_v18, %v243_v17  ;;  %v255_v22 = vadd.f32 %v253_v20, %v244_v19 }
  0x21   : > { %256 = vst [vmem:[%s204_s5] sm:$0xff] %v254_v21  ;;  %257 = vst [vmem:[%s204_s5 + $0x8] sm:$0xff] %v255_v22  ;;  %v258_v23 = vadd.f32 %v255_v22, %v254_v21 }
  0x23   : > { %v259_v24 = vrot.slane %v258_v23, 4 }
  0x25   : > { %v260_v25 = vadd.f32 %v259_v24, %v258_v23 }
  0x27   : > { %v261_v26 = vrot.slane %v260_v25, 2 }
  0x29   : > { %v262_v27 = vadd.f32 %v261_v26, %v260_v25 }
  0x2b   : > { %v263_v28 = vrot.slane %v262_v27, 1 }
  0x2d   : > { %v264_v29 = vadd.f32 %v263_v28, %v262_v27 }
  0x2f   : > { %v265_v30 = vmul.f32 0.0625, %v264_v29 }
  0x31   : > { %v266_v31 = vsub.f32 %v254_v21, %v265_v30  ;;  %v267_v32 = vsub.f32 %v255_v22, %v265_v30 }
  0x33   : > { %v268_v33 = vmul.f32 %v266_v31, %v266_v31  ;;  %v269_v34 = vmul.f32 %v267_v32, %v267_v32 }
  0x35   : > { %v270_v35 = vadd.f32 %v269_v34, %v268_v33 }
  0x37   : > { %v271_v36 = vrot.slane %v270_v35, 4 }
  0x39   : > { %v272_v37 = vadd.f32 %v271_v36, %v270_v35 }
  0x3b   : > { %v273_v38 = vrot.slane %v272_v37, 2 }
  0x3d   : > { %v274_v39 = vadd.f32 %v273_v38, %v272_v37 }
  0x3f   : > { %v275_v40 = vrot.slane %v274_v39, 1 }
  0x41   : > { %v276_v41 = vadd.f32 %v275_v40, %v274_v39 }
  0x43   : > { %v278_v42 = vsel %vm277_vm0, %v264_v29, %v276_v41 }
  0x44   : > { %279 = vst [vmem:[%s208_s9] sm:$0x3] %v278_v42 }
  0x45 PF: > { %s15_s15 = sadd.s32 1, %s399_s15  }
  0x46   : > { %p12_p4 = scmp.ge.s32.totalorder %s15_s15, 4  }
  0x48   :  { %14 = sbr.rel (!%p12_p4) target bundleno = 1 (0x1), region = 74 }

// kernel: convolution_module.3
= control target key start
LH: loop header
LB: loop body
LE: loop exit
PB: predicated region body
PF: predicated region fallthrough
CT: control target
= control target key end

     0   :  { %v256_v3 = vmov 0.0   ;;  %v52_v53 = vlaneseq  ;;  %s404_s1 = inlined_call_operand.vmem [shape: f32[128,256], index: 1, kind: input, shape index: {}]   ;;  %s405_s0 = inlined_call_operand.vmem [shape: f32[32,128], index: 0, kind: input, shape index: {}]   ;;  %s406_s2 = inlined_call_operand.vmem [shape: f32[1,256], index: 2, kind: input, shape index: {}]   ;;  %s407_s3 = inlined_call_operand.vmem [shape: f32[32,128], index: 3, kind: output, shape index: {}]  }
   0x1   :  { %v19_v0 = vld [vmem:[%s404_s1 + $0x8] sm:$0xff]  ;;  %v21_v1 = vld [vmem:[%s404_s1 + $0x18] sm:$0xff]  ;;  %v18_v2 = vld [vmem:[%s404_s1] sm:$0xff]  ;;  %126 = vmatprep.mubr.f32.mxu0 %v256_v3  ;;  %138 = vmatprep.mubr.f32.mxu1 %v256_v3 }
   0x2   :  { %v191_v4 = vpack.c.bf16 %v21_v1, %v19_v0  ;;  %v20_v5 = vld [vmem:[%s404_s1 + $0x10] sm:$0xff]  ;;  %v23_v6 = vld [vmem:[%s404_s1 + $0x28] sm:$0xff]  ;;  %v25_v7 = vld [vmem:[%s404_s1 + $0x38] sm:$0xff]  ;;  %v53_v54 = vshrl.u32 %v52_v53, 7 }
   0x3   :  { %v193_v8 = vpack.c.bf16 %v20_v5, %v18_v2  ;;  %v195_v9 = vpack.c.bf16 %v25_v7, %v23_v6  ;;  %v22_v10 = vld [vmem:[%s404_s1 + $0x20] sm:$0xff]  ;;  %v24_v11 = vld [vmem:[%s404_s1 + $0x30] sm:$0xff]  ;;  %v27_v12 = vld [vmem:[%s404_s1 + $0x48] sm:$0xff] }
   0x4   :  { %192 = vmatprep.subr.bf16.mxu0 %v191_v4  ;;  %223 = vmatprep.subr.bf16.mxu1 %v191_v4  ;;  %v29_v13 = vld [vmem:[%s404_s1 + $0x58] sm:$0xff]  ;;  %v197_v14 = vpack.c.bf16 %v24_v11, %v22_v10  ;;  %v26_v16 = vld [vmem:[%s404_s1 + $0x40] sm:$0xff]  ;;  %v28_v17 = vld [vmem:[%s404_s1 + $0x50] sm:$0xff]  ;;  %v58_v55 = vsub.s32 1, %v53_v54 }
   0x5   :  { %194 = vmatpush1.bf16.msra.mxu0 %v193_v8  ;;  %231 = vmatpush1.bf16.msra.mxu1 %v193_v8  ;;  %v199_v15 = vpack.c.bf16 %v29_v13, %v27_v12  ;;  %v31_v18 = vld [vmem:[%s404_s1 + $0x68] sm:$0xff]  ;;  %v33_v19 = vld [vmem:[%s404_s1 + $0x78] sm:$0xff]  ;;  %v201_v20 = vpack.c.bf16 %v28_v17, %v26_v16  ;;  %v30_v22 = vld [vmem:[%s404_s1 + $0x60] sm:$0xff] }
   0x6   :  { %196 = vmatprep.subr.bf16.mxu0 %v195_v9  ;;  %224 = vmatprep.subr.bf16.mxu1 %v195_v9  ;;  %v203_v21 = vpack.c.bf16 %v33_v19, %v31_v18  ;;  %v32_v23 = vld [vmem:[%s404_s1 + $0x70] sm:$0xff]  ;;  %v35_v24 = vld [vmem:[%s404_s1 + $0x88] sm:$0xff]  ;;  %v37_v25 = vld [vmem:[%s404_s1 + $0x98] sm:$0xff] }
   0x7   :  { %v205_v26 = vpack.c.bf16 %v32_v23, %v30_v22  ;;  %v207_v27 = vpack.c.bf16 %v37_v25, %v35_v24  ;;  %v34_v28 = vld [vmem:[%s404_s1 + $0x80] sm:$0xff]  ;;  %v36_v29 = vld [vmem:[%s404_s1 + $0x90] sm:$0xff]  ;;  %v39_v30 = vld [vmem:[%s404_s1 + $0xa8] sm:$0xff] }
   0x8   :  { %v41_v31 = vld [vmem:[%s404_s1 + $0xb8] sm:$0xff]  ;;  %v209_v32 = vpack.c.bf16 %v36_v29, %v34_v28  ;;  %v38_v34 = vld [vmem:[%s404_s1 + $0xa0] sm:$0xff]  ;;  %v40_v35 = vld [vmem:[%s404_s1 + $0xb0] sm:$0xff] }
   0x9   :  { %198 = vmatpush1.bf16.msra.mxu0 %v197_v14  ;;  %232 = vmatpush1.bf16.msra.mxu1 %v197_v14  ;;  %v211_v33 = vpack.c.bf16 %v41_v31, %v39_v30  ;;  %v43_v36 = vld [vmem:[%s404_s1 + $0xc8] sm:$0xff]  ;;  %v45_v37 = vld [vmem:[%s404_s1 + $0xd8] sm:$0xff]  ;;  %v213_v38 = vpack.c.bf16 %v40_v35, %v38_v34  ;;  %v42_v40 = vld [vmem:[%s404_s1 + $0xc0] sm:$0xff] }
   0xa   :  { %200 = vmatprep.subr.bf16.mxu0 %v199_v15  ;;  %225 = vmatprep.subr.bf16.mxu1 %v199_v15  ;;  %v215_v39 = vpack.c.bf16 %v45_v37, %v43_v36  ;;  %v44_v41 = vld [vmem:[%s404_s1 + $0xd0] sm:$0xff]  ;;  %v47_v42 = vld [vmem:[%s404_s1 + $0xe8] sm:$0xff]  ;;  %v49_v43 = vld [vmem:[%s404_s1 + $0xf8] sm:$0xff]  ;;  %v54_v15 = vsub.s32 0, %v53_v54 }
   0xb   :  { %v217_v44 = vpack.c.bf16 %v44_v41, %v42_v40  ;;  %v219_v45 = vpack.c.bf16 %v49_v43, %v47_v42  ;;  %v46_v46 = vld [vmem:[%s404_s1 + $0xe0] sm:$0xff]  ;;  %v48_v47 = vld [vmem:[%s404_s1 + $0xf0] sm:$0xff]  ;;  %v15_v51 = vld [vmem:[%s405_s0 + $0x8] sm:$0xff] }
   0xc   :  { %v221_v48 = vpack.c.bf16 %v48_v47, %v46_v46  ;;  %v14_v49 = vld [vmem:[%s405_s0] sm:$0xff]  ;;  %v16_v50 = vld [vmem:[%s405_s0 + $0x10] sm:$0xff]  ;;  %v17_v52 = vld [vmem:[%s405_s0 + $0x18] sm:$0xff] }
   0xd   :  { %202 = vmatpush1.bf16.msra.mxu0 %v201_v20  ;;  %233 = vmatpush1.bf16.msra.mxu1 %v201_v20  ;;  %v50_v56 = vld [vmem:[%s406_s2] sm:$0x3] }
   0xe   :  { %204 = vmatprep.subr.bf16.mxu0 %v203_v21  ;;  %226 = vmatprep.subr.bf16.mxu1 %v203_v21  ;;  %v59_v57 = vrot.slane %v50_v56, %v58_v55  ;;  %v55_v19 = vrot.slane %v50_v56, %v54_v15 }
  0x11   :  { %206 = vmatpush1.bf16.msra.mxu0 %v205_v26  ;;  %234 = vmatpush1.bf16.msra.mxu1 %v205_v26 }
  0x12   :  { %208 = vmatprep.subr.bf16.mxu0 %v207_v27  ;;  %227 = vmatprep.subr.bf16.mxu1 %v207_v27 }
  0x15   :  { %210 = vmatpush1.bf16.msra.mxu0 %v209_v32  ;;  %235 = vmatpush1.bf16.msra.mxu1 %v209_v32 }
  0x16   :  { %212 = vmatprep.subr.bf16.mxu0 %v211_v33  ;;  %228 = vmatprep.subr.bf16.mxu1 %v211_v33 }
  0x19   :  { %214 = vmatpush1.bf16.msra.mxu0 %v213_v38  ;;  %236 = vmatpush1.bf16.msra.mxu1 %v213_v38 }
  0x1a   :  { %216 = vmatprep.subr.bf16.mxu0 %v215_v39  ;;  %229 = vmatprep.subr.bf16.mxu1 %v215_v39 }
  0x1d   :  { %218 = vmatpush1.bf16.msra.mxu0 %v217_v44  ;;  %237 = vmatpush1.bf16.msra.mxu1 %v217_v44 }
  0x1e   :  { %220 = vmatprep.subr.bf16.mxu0 %v219_v45  ;;  %230 = vmatprep.subr.bf16.mxu1 %v219_v45 }
  0x21   :  { %222 = vmatpush1.bf16.msra.mxu0 %v221_v48  ;;  %238 = vmatpush1.bf16.msra.mxu1 %v221_v48 }
  0x24   :  { %127 = vmatmul.mubr.f32.vlgmr.msra.gmra.mrb[0].mxu0 %v14_v49  ;;  %139 = vmatmul.mubr.f32.vlgmr.msra.gmra.mrb[0].mxu1 %v16_v50 }
  0x25   :  { %132 = vmatprep.mubr.f32.mxu0 %v256_v3  ;;  %144 = vmatprep.mubr.f32.mxu1 %v256_v3 }
  0x28   :  { %133 = vmatmul.mubr.f32.gmra.mrb[2].mxu0 %v15_v51  ;;  %145 = vmatmul.mubr.f32.gmra.mrb[2].mxu1 %v17_v52 }
  0xf7   :  { %v128_v58 = vpop.f32.mrb[0].mxu0  ;;  %v140_v59 = vpop.f32.mrb[0].mxu1 }
  0xf8   :  { %v130_v60 = vpop.f32.mrb[1].mxu0  ;;  %v142_v61 = vpop.f32.mrb[1].mxu1  ;;  %v129_v20 = vadd.f32 %v128_v58, %v55_v19  ;;  %v141_v22 = vadd.f32 %v140_v59, %v55_v19 }
  0xf9   :  { %v131_v62 = vadd.f32 %v130_v60, %v59_v57  ;;  %v143_v63 = vadd.f32 %v142_v61, %v59_v57 }
  0xfb   :  { %v187_v0 = vmul.f32 -1.442695, %v131_v62  ;;  %v189_v1 = vmul.f32 -1.442695, %v143_v63  ;;  %v134_v2 = vpop.f32.mrb[2].mxu0  ;;  %v146_v3 = vpop.f32.mrb[2].mxu1 }
  0xfc   :  { %v136_v4 = vpop.f32.mrb[3].mxu0  ;;  %v148_v5 = vpop.f32.mrb[3].mxu1  ;;  %v135_v26 = vadd.f32 %v134_v2, %v55_v19  ;;  %v147_v28 = vadd.f32 %v146_v3, %v55_v19 }
  0xfd   :  { %240 = vpow2.f32 %v187_v0  ;;  %v137_v6 = vadd.f32 %v136_v4, %v59_v57  ;;  %v149_v7 = vadd.f32 %v148_v5, %v59_v57 }
  0xfe   :  { %242 = vpow2.f32 %v189_v1 }
  0xff   :  { %v188_v8 = vmul.f32 -1.442695, %v137_v6  ;;  %v190_v9 = vmul.f32 -1.442695, %v149_v7 }
 0x101   :  { %244 = vpow2.f32 %v188_v8 }
 0x102   :  { %246 = vpow2.f32 %v190_v9 }
 0x107   :  { %v241_v10 = vpop.eup %240 }
 0x108   :  { %v243_v11 = vpop.eup %242  ;;  %v163_v12 = vadd.f32 1.0, %v241_v10 }
 0x109   :  { %v165_v13 = vadd.f32 1.0, %v243_v11 }
 0x10a   :  { %248 = vrcp.f32 %v163_v12 }
 0x10b   :  { %v245_v14 = vpop.eup %244  ;;  %250 = vrcp.f32 %v165_v13 }
 0x10c   :  { %v247_v16 = vpop.eup %246  ;;  %v164_v17 = vadd.f32 1.0, %v245_v14 }
 0x10d   :  { %v166_v18 = vadd.f32 1.0, %v247_v16 }
 0x10e   :  { %252 = vrcp.f32 %v164_v17 }
 0x10f   :  { %254 = vrcp.f32 %v166_v18 }
 0x114   :  { %v249_v21 = vpop.eup %248 }
 0x115   :  { %v251_v23 = vpop.eup %250  ;;  %v175_v24 = vmul.f32 %v249_v21, %v129_v20 }
 0x116   :  { %v177_v25 = vmul.f32 %v251_v23, %v141_v22 }
 0x117   :  { %179 = vst [vmem:[%s407_s3] sm:$0xff] %v175_v24 }
 0x118   :  { %v253_v27 = vpop.eup %252  ;;  %181 = vst [vmem:[%s407_s3 + $0x10] sm:$0xff] %v177_v25 }
 0x119   :  { %v255_v29 = vpop.eup %254  ;;  %v176_v30 = vmul.f32 %v253_v27, %v135_v26 }
 0x11a   :  { %v178_v31 = vmul.f32 %v255_v29, %v147_v28 }
 0x11b   :  { %180 = vst [vmem:[%s407_s3 + $0x8] sm:$0xff] %v176_v30 }
 0x11c   :  { %182 = vst [vmem:[%s407_s3 + $0x18] sm:$0xff] %v178_v31 }

// kernel: convolution_module.5
= control target key start
LH: loop header
LB: loop body
LE: loop exit
PB: predicated region body
PF: predicated region fallthrough
CT: control target
= control target key end

     0   :  { %s386_s3 = inlined_call_operand.vmem [shape: f32[128,128], index: 3, kind: input, shape index: {}]   ;;  %s387_s0 = inlined_call_operand.vmem [shape: f32[32,128], index: 0, kind: input, shape index: {}]   ;;  %s388_s1 = inlined_call_operand.vmem [shape: f32[1,128], index: 1, kind: input, shape index: {}]   ;;  %s389_s2 = inlined_call_operand.vmem [shape: f32[1,128], index: 2, kind: input, shape index: {}]   ;;  %s390_s4 = inlined_call_operand.vmem [shape: f32[1,128], index: 4, kind: input, shape index: {}]   ;;  %s391_s5 = inlined_call_operand.vmem [shape: f32[32,128], index: 5, kind: output, shape index: {}]  }
   0x1   :  { %v50_v0 = vld [vmem:[%s386_s3] sm:$0xff]  ;;  %v51_v1 = vld [vmem:[%s386_s3 + $0x8] sm:$0xff]  ;;  %v52_v2 = vld [vmem:[%s386_s3 + $0x10] sm:$0xff] }
   0x2   :  { %v227_v3 = vpack.c.bf16 %v51_v1, %v50_v0  ;;  %v53_v4 = vld [vmem:[%s386_s3 + $0x18] sm:$0xff]  ;;  %v54_v6 = vld [vmem:[%s386_s3 + $0x20] sm:$0xff]  ;;  %v55_v7 = vld [vmem:[%s386_s3 + $0x28] sm:$0xff] }
   0x3   :  { %v231_v5 = vpack.c.bf16 %v53_v4, %v52_v2  ;;  %v235_v8 = vpack.c.bf16 %v55_v7, %v54_v6  ;;  %v56_v9 = vld [vmem:[%s386_s3 + $0x30] sm:$0xff]  ;;  %v20_v10 = vld [vmem:[%s387_s0] sm:$0xff]  ;;  %v57_v12 = vld [vmem:[%s386_s3 + $0x38] sm:$0xff] }
   0x4   :  { %228 = vmatprep.subr.bf16.mxu0 %v227_v3  ;;  %259 = vmatprep.subr.bf16.mxu1 %v227_v3  ;;  %v166_v11 = vld [vmem:[%s388_s1] ss:$0 sm:$0xff]  ;;  %v22_v15 = vld [vmem:[%s387_s0 + $0x10] sm:$0xff]  ;;  %v239_v18 = vpack.c.bf16 %v57_v12, %v56_v9  ;;  %v59_v21 = vld [vmem:[%s386_s3 + $0x48] sm:$0xff] }
   0x5   :  { %230 = vmatpush3.bf16.msra.mxu0 %v227_v3  ;;  %267 = vmatpush3.bf16.msra.mxu1 %v227_v3  ;;  %v31_v13 = vmul.f32 %v166_v11, %v20_v10  ;;  %v167_v14 = vld [vmem:[%s389_s2] ss:$0 sm:$0xff]  ;;  %v33_v16 = vmul.f32 %v166_v11, %v22_v15  ;;  %v60_v25 = vld [vmem:[%s386_s3 + $0x50] sm:$0xff]  ;;  %v61_v26 = vld [vmem:[%s386_s3 + $0x58] sm:$0xff] }
   0x6   :  { %232 = vmatprep.subr.bf16.mxu0 %v231_v5  ;;  %260 = vmatprep.subr.bf16.mxu1 %v231_v5  ;;  %v58_v20 = vld [vmem:[%s386_s3 + $0x40] sm:$0xff]  ;;  %v247_v27 = vpack.c.bf16 %v61_v26, %v60_v25  ;;  %v63_v29 = vld [vmem:[%s386_s3 + $0x68] sm:$0xff]  ;;  %v23_v31 = vld [vmem:[%s387_s0 + $0x18] sm:$0xff] }
   0x7   :  { %v42_v17 = vadd.f32 %v167_v14, %v31_v13  ;;  %v44_v19 = vadd.f32 %v167_v14, %v33_v16  ;;  %v243_v24 = vpack.c.bf16 %v59_v21, %v58_v20  ;;  %v62_v28 = vld [vmem:[%s386_s3 + $0x60] sm:$0xff]  ;;  %v21_v30 = vld [vmem:[%s387_s0 + $0x8] sm:$0xff]  ;;  %v64_v33 = vld [vmem:[%s386_s3 + $0x70] sm:$0xff]  ;;  %v34_v36 = vmul.f32 %v166_v11, %v23_v31 }
   0x8   :  { %v251_v32 = vpack.c.bf16 %v63_v29, %v62_v28  ;;  %v65_v34 = vld [vmem:[%s386_s3 + $0x78] sm:$0xff]  ;;  %v32_v35 = vmul.f32 %v166_v11, %v21_v30  ;;  %v168_v42 = vld [vmem:[%s390_s4] ss:$0 sm:$0xff] }
   0x9   :  { %234 = vmatpush3.bf16.msra.mxu0 %v231_v5  ;;  %268 = vmatpush3.bf16.msra.mxu1 %v231_v5  ;;  %v46_v22 = vmax.f32 %v42_v17, 0.0  ;;  %v48_v23 = vmax.f32 %v44_v19, 0.0  ;;  %v255_v37 = vpack.c.bf16 %v65_v34, %v64_v33  ;;  %v45_v39 = vadd.f32 %v167_v14, %v34_v36 }
   0xa   :  { %236 = vmatprep.subr.bf16.mxu0 %v235_v8  ;;  %261 = vmatprep.subr.bf16.mxu1 %v235_v8  ;;  %v43_v38 = vadd.f32 %v167_v14, %v32_v35 }
   0xb   :  { %221 = vmatprep.mubr.f32.mxu0 %v46_v22  ;;  %224 = vmatprep.mubr.f32.mxu1 %v48_v23  ;;  %v49_v41 = vmax.f32 %v45_v39, 0.0 }
   0xc   :  { %v47_v40 = vmax.f32 %v43_v38, 0.0 }
   0xd   :  { %238 = vmatpush3.bf16.msra.mxu0 %v235_v8  ;;  %269 = vmatpush3.bf16.msra.mxu1 %v235_v8 }
   0xe   :  { %240 = vmatprep.subr.bf16.mxu0 %v239_v18  ;;  %262 = vmatprep.subr.bf16.mxu1 %v239_v18 }
  0x11   :  { %242 = vmatpush3.bf16.msra.mxu0 %v239_v18  ;;  %270 = vmatpush3.bf16.msra.mxu1 %v239_v18 }
  0x12   :  { %244 = vmatprep.subr.bf16.mxu0 %v243_v24  ;;  %263 = vmatprep.subr.bf16.mxu1 %v243_v24 }
  0x15   :  { %246 = vmatpush3.bf16.msra.mxu0 %v243_v24  ;;  %271 = vmatpush3.bf16.msra.mxu1 %v243_v24 }
  0x16   :  { %248 = vmatprep.subr.bf16.mxu0 %v247_v27  ;;  %264 = vmatprep.subr.bf16.mxu1 %v247_v27 }
  0x19   :  { %250 = vmatpush3.bf16.msra.mxu0 %v247_v27  ;;  %272 = vmatpush3.bf16.msra.mxu1 %v247_v27 }
  0x1a   :  { %252 = vmatprep.subr.bf16.mxu0 %v251_v32  ;;  %265 = vmatprep.subr.bf16.mxu1 %v251_v32 }
  0x1d   :  { %254 = vmatpush3.bf16.msra.mxu0 %v251_v32  ;;  %273 = vmatpush3.bf16.msra.mxu1 %v251_v32 }
  0x1e   :  { %256 = vmatprep.subr.bf16.mxu0 %v255_v37  ;;  %266 = vmatprep.subr.bf16.mxu1 %v255_v37 }
  0x21   :  { %258 = vmatpush3.bf16.msra.mxu0 %v255_v37  ;;  %274 = vmatpush3.bf16.msra.mxu1 %v255_v37 }
  0x24   :  { %222 = vmatmul.mubr.f32.vlgmr.msra.gmra.mrb[0].mxu0 %v47_v40  ;;  %225 = vmatmul.mubr.f32.vlgmr.msra.gmra.mrb[0].mxu1 %v49_v41 }
  0xf7   :  { %v223_v43 = vpop.f32.mrb[0].mxu0  ;;  %v226_v44 = vpop.f32.mrb[0].mxu1 }
  0xf8   :  { %v145_v45 = vadd.f32 %v223_v43, %v168_v42  ;;  %v155_v46 = vadd.f32 %v226_v44, %v168_v42  ;;  %v139_v47 = vpop.f32.mrb[1].mxu0  ;;  %v149_v48 = vpop.f32.mrb[1].mxu1 }
  0xf9   :  { %v140_v49 = vadd.f32 %v168_v42, %v139_v47  ;;  %v150_v50 = vadd.f32 %v168_v42, %v149_v48 }
  0xfa   :  { %159 = vst [vmem:[%s391_s5 + $0x8] sm:$0xff] %v145_v45  ;;  %161 = vst [vmem:[%s391_s5 + $0x18] sm:$0xff] %v155_v46 }
  0xfb   :  { %158 = vst [vmem:[%s391_s5] sm:$0xff] %v140_v49  ;;  %160 = vst [vmem:[%s391_s5 + $0x10] sm:$0xff] %v150_v50 }

</bundles_post_ra>
